<compile_context>
chip_gen: v6e
topology: v6e:2x2x1
jax: 0.10.0
libtpu: 0.0.40
codegen_flags: <defaults>
</compile_context>

<pallas_src>
import functools

import jax
import jax.numpy as jnp
from jax import lax
from jax.experimental import pallas as pl
from jax.experimental.pallas import tpu as pltpu

_LANE = 128


def _round_up(x, m):
    return (x + m - 1) // m * m


def _self_attention_kernel(x_ref, w_ref, b_ref, r_ref, alpha_ref, *,
                           is_residual, tq, n_valid):
    # x_ref:     (1, C, Npad)  full keys/values block for this batch element
    # w_ref:     (A, C)        1x1-conv weight
    # b_ref:     (A, 1)        1x1-conv bias
    # r_ref:     (1, C, TQ)    relu(attention (+ residual)) for this query tile
    # alpha_ref: (1, TQ, Npad) softmax rows for this query tile
    x = x_ref[0]                                   # (C, Npad)
    w = w_ref[...]                                 # (A, C)
    b = b_ref[...]                                 # (A, 1)
    n_pad = x.shape[-1]

    # 1x1 conv == per-pixel channel matmul + bias broadcast.  (Tiny A,C:
    # MXU is underutilized here, but the cost is negligible vs. the N^2 work;
    # batch-folding the conv was intentionally skipped to keep the query
    # tiling simple.)
    g = jnp.dot(w, x, preferred_element_type=jnp.float32) + b          # (A, Npad)

    if tq == n_pad:
        x_q = x
        g_q = g
    else:
        q0 = pl.multiple_of(pl.program_id(1) * tq, tq)
        x_q = x_ref[0, :, pl.ds(q0, tq)]                                # (C, TQ)
        g_q = jnp.dot(w, x_q, preferred_element_type=jnp.float32) + b  # (A, TQ)

    # scores[n, m] = sum_a g_q[a, n] * g[a, m]
    scores = lax.dot_general(g_q, g, (((0,), (0,)), ((), ())),
                             preferred_element_type=jnp.float32)       # (TQ, Npad)

    # Mask padded key columns so the softmax only sees the valid N columns.
    if n_valid < n_pad:
        col = lax.broadcasted_iota(jnp.int32, scores.shape, 1)
        scores = jnp.where(col < n_valid, scores, -jnp.inf)

    # Numerically-stable softmax; the per-row divide is replaced by an EUP
    # approx reciprocal + VPU multiply.
    m = jnp.max(scores, axis=-1, keepdims=True)
    e = jnp.exp(scores - m)                                            # (TQ, Npad)
    inv = pl.reciprocal(jnp.sum(e, axis=-1, keepdims=True), approx=True)  # (TQ, 1)
    alpha = e * inv                                                    # f32 (TQ, Npad)
    alpha_ref[0] = alpha.astype(alpha_ref.dtype)

    # r[c, n] = sum_m alpha[n, m] * x[c, m].  alpha is materialized for the
    # output anyway, so reusing the f32 value here costs no extra N^2 work
    # and avoids a (TQ,1)->(1,TQ) relayout of the reciprocal.
    r = lax.dot_general(x, alpha, (((1,), (1,)), ((), ())),
                        preferred_element_type=jnp.float32)            # (C, TQ)
    if is_residual:
        r = r + x_q
    r_ref[0] = jnp.maximum(r, 0.0).astype(r_ref.dtype)


@functools.partial(
    jax.jit,
    static_argnames=("is_residual", "alpha_dtype", "tq", "vmem_limit_bytes"))
def self_attention(x_nchw, w, bias, *, is_residual=True,
                   alpha_dtype=jnp.float32, tq=None,
                   vmem_limit_bytes=48 * 1024 * 1024):
    """x_nchw: (B, C, H, W); w: (A, C) 1x1-conv weight; bias: (A,)."""
    B, C, H, W = x_nchw.shape
    N = H * W
    A = w.shape[0]

    # Pad the spatial axis to a lane multiple so every alpha / r store is a
    # full, unmasked vst.  Padded key columns are masked in the kernel;
    # padded query rows / columns are sliced off below.
    n_pad = max(_LANE, _round_up(N, _LANE))
    x = x_nchw.reshape(B, C, N)
    if n_pad != N:
        x = jnp.pad(x, ((0, 0), (0, 0), (0, n_pad - N)))
    b2 = bias.reshape(A, 1)

    # Query-row tile: biggest block that fits is fastest on v5e/v6e (128 MiB
    # VMEM); cap it for large N so the (TQ, Npad) temporaries and the
    # double-buffered alpha block stay inside v7x's 64 MiB VMEM.
    if tq is None:
        tq = n_pad if n_pad <= 1024 else 512
    if tq >= n_pad or n_pad % tq != 0 or tq % _LANE != 0:
        tq = n_pad
    n_q = n_pad // tq

    kernel = functools.partial(_self_attention_kernel,
                               is_residual=is_residual, tq=tq, n_valid=N)

    # Aliasing r onto x is only safe when each batch's x block is consumed in
    # the same (single) grid step that writes its r block.
    io_aliases = {0: 0} if n_q == 1 else {}

    r, alpha = pl.pallas_call(
        kernel,
        grid=(B, n_q),
        in_specs=[
            pl.BlockSpec((1, C, n_pad), lambda b, q: (b, 0, 0)),   # x (keys/values)
            pl.BlockSpec((A, C), lambda b, q: (0, 0)),             # conv weight
            pl.BlockSpec((A, 1), lambda b, q: (0, 0)),             # conv bias
        ],
        out_specs=[
            pl.BlockSpec((1, C, tq), lambda b, q: (b, 0, q)),      # relu(r (+ x))
            pl.BlockSpec((1, tq, n_pad), lambda b, q: (b, q, 0)),  # alpha rows
        ],
        out_shape=[
            jax.ShapeDtypeStruct((B, C, n_pad), x.dtype),
            jax.ShapeDtypeStruct((B, n_pad, n_pad), alpha_dtype),
        ],
        input_output_aliases=io_aliases,
        compiler_params=pltpu.CompilerParams(
            dimension_semantics=("parallel", "parallel"),
            vmem_limit_bytes=vmem_limit_bytes),
    )(x, w, b2)

    if n_pad != N:
        r = r[:, :, :N]
        alpha = alpha[:, :N, :N]
    return r.reshape(B, C, H, W), alpha


def _reference(x, w, bias, *, is_residual):
    B, C, H, W = x.shape
    xf = x.reshape(B, C, H * W)
    g = jnp.einsum("ac,bcn->ban", w, xf) + bias[None, :, None]
    scores = jnp.einsum("ban,bam->bnm", g, g)
    alpha = jax.nn.softmax(scores, axis=-1)
    r = jnp.einsum("bnm,bcm->bcn", alpha, xf)
    if is_residual:
        r = r + xf
    return jax.nn.relu(r).reshape(B, C, H, W), alpha


if __name__ == "__main__":
    key = jax.random.PRNGKey(0)

    # --- Case 1: module-consistent small shape (input_nf=atten_nf=4, 16x16) ---
    B, C, H, W = 2, 4, 16, 16
    A = 4
    kx, kw, kb, kx2 = jax.random.split(key, 4)
    x = jax.random.normal(kx, (B, C, H, W), jnp.float32)
    w = 0.5 * jax.random.normal(kw, (A, C), jnp.float32)      # Conv2d(4,4,1) weight
    bias = 0.1 * jax.random.normal(kb, (A,), jnp.float32)     # Conv2d bias

    # Reference computed first (the kernel may alias/donate its x buffer).
    r_ref, a_ref = jax.block_until_ready(_reference(x, w, bias, is_residual=True))

    r, alpha = self_attention(x, w, bias, is_residual=True)
    jax.block_until_ready((r, alpha))

    assert r.shape == (B, C, H, W) and alpha.shape == (B, H * W, H * W)
    # approx reciprocal in the softmax -> slightly looser tolerances than f32 div.
    assert jnp.allclose(alpha, a_ref, atol=5e-3), "alpha mismatch vs reference"
    assert jnp.allclose(r, r_ref, atol=2e-2), "output mismatch vs reference"

    # --- Case 2: non-128-multiple spatial size (exercises the padding path) ---
    B2, H2, W2 = 1, 12, 12
    x2 = jax.random.normal(kx2, (B2, C, H2, W2), jnp.float32)
    r_ref2, a_ref2 = jax.block_until_ready(
        _reference(x2, w, bias, is_residual=False))
    r2, alpha2 = self_attention(x2, w, bias, is_residual=False)
    jax.block_until_ready((r2, alpha2))

    assert r2.shape == (B2, C, H2, W2) and alpha2.shape == (B2, H2 * W2, H2 * W2)
    assert jnp.allclose(alpha2, a_ref2, atol=5e-3), "alpha mismatch (padded case)"
    assert jnp.allclose(r2, r_ref2, atol=2e-2), "output mismatch (padded case)"

    print("KERNEL_OK")
</pallas_src>

<mosaic_0001>
module attributes {stable_mosaic.version = 11 : i64} {
  func.func @_self_attention_kernel(%arg0: i32, %arg1: i32, %arg2: memref<1x4x256xf32, #tpu.memory_space<vmem>>, %arg3: memref<4x4xf32, #tpu.memory_space<vmem>>, %arg4: memref<4x1xf32, #tpu.memory_space<vmem>>, %arg5: memref<1x4x256xf32, #tpu.memory_space<vmem>>, %arg6: memref<1x256x256xf32, #tpu.memory_space<vmem>>) attributes {dimension_semantics = [#tpu.dimension_semantics<parallel>, #tpu.dimension_semantics<parallel>], iteration_bounds = array<i64: 2, 1>, scalar_prefetch = 0 : i64, scratch_operands = 0 : i64, tpu.core_type = #tpu.core_type<tc>, window_params = [{transform_indices = @transform_0, window_bounds = array<i64: 1, 4, 256>}, {pipeline_mode = #tpu.pipeline_mode<synchronous>, transform_indices = @transform_1, window_bounds = array<i64: 4, 4>}, {pipeline_mode = #tpu.pipeline_mode<synchronous>, transform_indices = @transform_2, window_bounds = array<i64: 4, 1>}, {transform_indices = @transform_3, window_bounds = array<i64: 1, 4, 256>}, {transform_indices = @transform_4, window_bounds = array<i64: 1, 256, 256>}]} {
    %c0 = arith.constant 0 : index
    %c0_0 = arith.constant 0 : index
    %c0_1 = arith.constant 0 : index
    %0 = vector.load %arg2[%c0, %c0_0, %c0_1] : memref<1x4x256xf32, #tpu.memory_space<vmem>>, vector<1x4x256xf32>
    %1 = vector.shape_cast %0 : vector<1x4x256xf32> to vector<4x256xf32>
    %c0_2 = arith.constant 0 : index
    %c0_3 = arith.constant 0 : index
    %2 = vector.load %arg3[%c0_2, %c0_3] : memref<4x4xf32, #tpu.memory_space<vmem>>, vector<4x4xf32>
    %c0_4 = arith.constant 0 : index
    %c0_5 = arith.constant 0 : index
    %3 = vector.load %arg4[%c0_4, %c0_5] : memref<4x1xf32, #tpu.memory_space<vmem>>, vector<4x1xf32>
    %cst = arith.constant dense<0.000000e+00> : vector<4x256xf32>
    %4 = tpu.matmul %2, %1, %cst {dimension_numbers = #tpu.dot_dimension_numbers<[1], [0], [0], [1], [0, 0, 1, 1], [], []>} : vector<4x4xf32>, vector<4x256xf32>, vector<4x256xf32> -> vector<4x256xf32>
    %5 = vector.broadcast %3 : vector<4x1xf32> to vector<4x256xf32>
    %6 = arith.addf %4, %5 : vector<4x256xf32>
    %cst_6 = arith.constant dense<0.000000e+00> : vector<256x256xf32>
    %7 = tpu.matmul %6, %6, %cst_6 {dimension_numbers = #tpu.dot_dimension_numbers<[0], [0], [1], [1], [0, 1, 1, 1], [], []>} : vector<4x256xf32>, vector<4x256xf32>, vector<256x256xf32> -> vector<256x256xf32>
    %cst_7 = arith.constant dense<0xFF800000> : vector<256xf32>
    %8 = vector.multi_reduction <maximumf>, %7, %cst_7 [1] : vector<256x256xf32> to vector<256xf32>
    %9 = vector.shape_cast %8 : vector<256xf32> to vector<256x1xf32>
    %10 = vector.broadcast %9 : vector<256x1xf32> to vector<256x256xf32>
    %11 = arith.subf %7, %10 : vector<256x256xf32>
    %12 = math.exp %11 : vector<256x256xf32>
    %cst_8 = arith.constant dense<0.000000e+00> : vector<256xf32>
    %13 = vector.multi_reduction <add>, %12, %cst_8 [1] : vector<256x256xf32> to vector<256xf32>
    %14 = vector.shape_cast %13 : vector<256xf32> to vector<256x1xf32>
    %15 = tpu.reciprocal %14 {approx = true} : vector<256x1xf32> -> vector<256x1xf32>
    %16 = vector.broadcast %15 : vector<256x1xf32> to vector<256x256xf32>
    %17 = arith.mulf %12, %16 : vector<256x256xf32>
    %c0_9 = arith.constant 0 : index
    %c0_10 = arith.constant 0 : index
    %c0_11 = arith.constant 0 : index
    %18 = vector.load %arg6[%c0_9, %c0_10, %c0_11] : memref<1x256x256xf32, #tpu.memory_space<vmem>>, vector<1x256x256xf32>
    %19 = vector.shape_cast %18 : vector<1x256x256xf32> to vector<256x256xf32>
    %20 = vector.shape_cast %17 : vector<256x256xf32> to vector<1x256x256xf32>
    tpu.vector_store %arg6[%c0_9, %c0_10, %c0_11], %20 {strides = array<i32>} : memref<1x256x256xf32, #tpu.memory_space<vmem>>, vector<1x256x256xf32>,
    %cst_12 = arith.constant dense<0.000000e+00> : vector<4x256xf32>
    %21 = tpu.matmul %1, %17, %cst_12 {dimension_numbers = #tpu.dot_dimension_numbers<[1], [1], [0], [0], [0, 0, 1, 0], [], []>} : vector<4x256xf32>, vector<256x256xf32>, vector<4x256xf32> -> vector<4x256xf32>
    %22 = arith.addf %21, %1 : vector<4x256xf32>
    %cst_13 = arith.constant 0.000000e+00 : f32
    %23 = vector.broadcast %cst_13 : f32 to vector<4x256xf32>
    %24 = arith.maximumf %22, %23 : vector<4x256xf32>
    %c0_14 = arith.constant 0 : index
    %c0_15 = arith.constant 0 : index
    %c0_16 = arith.constant 0 : index
    %25 = vector.load %arg5[%c0_14, %c0_15, %c0_16] : memref<1x4x256xf32, #tpu.memory_space<vmem>>, vector<1x4x256xf32>
    %26 = vector.shape_cast %25 : vector<1x4x256xf32> to vector<4x256xf32>
    %27 = vector.shape_cast %24 : vector<4x256xf32> to vector<1x4x256xf32>
    tpu.vector_store %arg5[%c0_14, %c0_15, %c0_16], %27 {strides = array<i32>} : memref<1x4x256xf32, #tpu.memory_space<vmem>>, vector<1x4x256xf32>,
    return
  }
  func.func @transform_0(%arg0: i32, %arg1: i32) -> (i32, i32, i32) {
    %c0_i32 = arith.constant 0 : i32
    %c0_i32_0 = arith.constant 0 : i32
    %c0_i32_1 = arith.constant 0 : i32
    return %arg0, %c0_i32, %c0_i32_0 : i32, i32, i32
  }
  func.func @transform_1(%arg0: i32, %arg1: i32) -> (i32, i32) {
    %c0_i32 = arith.constant 0 : i32
    %c0_i32_0 = arith.constant 0 : i32
    %c0_i32_1 = arith.constant 0 : i32
    return %c0_i32, %c0_i32_0 : i32, i32
  }
  func.func @transform_2(%arg0: i32, %arg1: i32) -> (i32, i32) {
    %c0_i32 = arith.constant 0 : i32
    %c0_i32_0 = arith.constant 0 : i32
    %c0_i32_1 = arith.constant 0 : i32
    return %c0_i32, %c0_i32_0 : i32, i32
  }
  func.func @transform_3(%arg0: i32, %arg1: i32) -> (i32, i32, i32) {
    %c0_i32 = arith.constant 0 : i32
    %c0_i32_0 = arith.constant 0 : i32
    return %arg0, %c0_i32, %arg1 : i32, i32, i32
  }
  func.func @transform_4(%arg0: i32, %arg1: i32) -> (i32, i32, i32) {
    %c0_i32 = arith.constant 0 : i32
    %c0_i32_0 = arith.constant 0 : i32
    return %arg0, %arg1, %c0_i32 : i32, i32, i32
  }
}

</mosaic_0001>

<bundles_post_ra>
// kernel: self_attention.1
= control target key start
LH: loop header
LB: loop body
LE: loop exit
PB: predicated region body
PF: predicated region fallthrough
CT: control target
= control target key end

     0   :  { %10 = vsyncpa [#allocation3], 0  ;;  %s2720_s0 = inlined_call_operand.vmem [shape: f32[2,4,256], index: 0, kind: input, shape index: {}, may-alias: {0,3}]   ;;  %s2721_s1 = inlined_call_operand.vmem [shape: f32[4,4], index: 1, kind: input, shape index: {}]   ;;  %s2722_s2 = inlined_call_operand.vmem [shape: f32[4,1], index: 2, kind: input, shape index: {}]   ;;  %s2723_s3 = inlined_call_operand.vmem [shape: f32[2,4,256], index: 3, kind: output, shape index: {0}, may-alias: {0,3}]   ;;  %s2724_s4 = inlined_call_operand.hbm [shape: f32[2,256,256], index: 4, kind: output, shape index: {1}]  }
   0x1   :  { %12 = vsyncpa [#allocation3 + $0x1], 0  ;;  %s1928_s15 = smov 0   ;;  %s1930_s16 = smov 0  }
   0x2   :  { %s1932_s17 = smov 0   ;;  %s1934_s18 = smov 0  }
   0x3   :  { %s1936_s19 = smov 0   ;;  %s1938_s20 = smov 0  }
   0x4 LB: > { %s1511_s21 = sadd.s32 4294967295, %s1896_s20   ;;  %s1512_s22 = sadd.s32 4294967294, %s1896_s20   ;;  %s1896_s20 = sphi %s1938_s20, %s18_s20   ;;  %s1892_s19 = sphi %s1936_s19, %s2803_s19   ;;  %s1888_s18 = sphi %s1934_s18, %s2802_s18   ;;  %s1884_s17 = sphi %s1932_s17, %s2801_s17   ;;  %s1880_s16 = sphi %s1930_s16, %s2800_s16   ;;  %s1876_s15 = sphi %s1928_s15, %s2799_s15  }
   0x5   : > { %s30_s23 = sadd.s32 1, %s1892_s19  ;;  %s135_s24 = sadd.s32 1, %s1884_s17 }
   0x6   : > { %p32_p0 = scmp.ge.s32.totalorder %s30_s23, 2  ;;  %p145_p1 = scmp.ne.s32.totalorder %s1884_s17, %s1880_s16 }
   0x7   : > { %p146_p2 = scmp.eq.s32.totalorder %s1511_s21, 1  ;;  %p151_p3 = scmp.ne.s32.totalorder %s1880_s16, %s1876_s15 }
   0x8   : > { %s2805_s23 = smov (%p32_p0, %s30_s23), 0  ;;  %p152_p5 = scmp.eq.s32.totalorder %s1512_s22, 1 }
   0x9   : > { %p1968_p4 = por %p146_p2, %p145_p1  ;;  %s130_s26 = ssub.s32 %s1892_s19, %s2805_s23 }
   0xa   : > { %p1515_p6 = scmp.ge.s32.totalorder %s1896_s20, 1  ;;  %p133_p7 = scmp.eq.s32.totalorder %s130_s26, 0 }
   0xb   : > { %p1975_p8 = por %p152_p5, %p151_p3  ;;  %p184_p9 = scmp.lt.s32.totalorder %s1896_s20, 3 }
   0xc   : > { %s1981_s28 = scalar_select %p133_p7, %s1884_s17, %s135_s24  }
   0xd   : > { %p185_p10 = pnand %p1515_p6, %p184_p9 }
   0xf   : > { %188 = sbr.rel (%p185_p10) target bundleno = 1253 (0x4e5), region = 32 }
  0x14   : > { %p219_p11 = scmp.lt.s32.totalorder %s1888_s18, 1  ;;  %v1898_v0 = vmov 0.0   ;;  %v237_v1 = vld [vmem:[%s2722_s2] sm:$0xf]  ;;  %v1899_v2 = vmov 0   ;;  %vm249_vm0 = vcmask 1043456  }
  0x15   : > { %318 = vmatprep.mubr.f32.mxu0 %v1898_v0  ;;  %555 = vmatprep.mubr.f32.mxu1 %v1898_v0  ;;  %v236_v5 = vld [vmem:[%s2721_s1] sm:$0xf]  ;;  %vm245_vm1 = vcmask 31744   ;;  %s216_s12 = sand.u32 1, %s1880_s16   ;;  %s1565_s21 = sshll.u32 %s1888_s18, 13 }
  0x16   : > { %s1990_s5 = scalar_select %p219_p11, %s1888_s18, 1  ;;  %1625 = vset.pattern.permute.xlu0 %v1899_v2 }
  0x17   : > { %240 = vperm.xlu0 %1625, %v237_v1   ;;  %s1516_s13 = sshll.u32 %s216_s12, 9  ;;  %s2663_s29 = scalar_lea.hbm %s2724_s4, %s1565_s21 }
  0x18   : > { %s1563_s6 = sshll.u32 %s1990_s5, 3  ;;  %s2529_s14 = scalar_lea.vmem [#allocation2], %s1516_s13 }
  0x19   : > { %s1998_s9 = scalar_lea.vmem %s2720_s0, %s1563_s6  ;;  %s1401_s22 = sshll.u32 %s2529_s14, 4  ;;  %s2665_s22 = int_to_ptr.vmem [resolvable:$true] %s1401_s22 }
  0x1a   : > { %v235_v3 = vld [vmem:[%s1998_s9] sm:$0xff]  ;;  %s2669_s30 = scalar_lea.sflag [#allocation3], %s216_s12  ;;  %s1820_s7 = scalar_lea.vmem %s2665_s22, 8192 }
  0x1b   : > { %v2001_v4 = vcombine.high %v235_v3, %v235_v3  ;;  %p1821_p12 = scmp.ne.s32.totalorder %s2665_s22, %s1820_s7  ;;  %s1900_s18 = smov [#allocation2]  }
  0x1c   : > { %s1824_s8 = sshll.u32 %s1900_s18, 4  ;;  %s1825_s8 = int_to_ptr.vmem [resolvable:$false] %s1824_s8 }
  0x1d   : > { %2751 = vst [vmem:[#allocation5_spill] sm:$0xff] %v2001_v4  ;;  %1521 = vmatprep.subr.msk.mxu0 %vm249_vm0, %v2001_v4  ;;  %p1822_p13 = pnand %p1821_p12, %p1968_p4  ;;  %p1827_p1 = scmp.lt.s32.totalorder %s2665_s22, %s1825_s8 }
  0x1e   : > { %1522 = vmatpush1.msk.msra.mxu0 %vm249_vm0, %v235_v3 }
  0x1f   : > { %1523 = vmatmul.mubr.msk.f32.vlgmr.msra.gmra.mxu0 %vm245_vm1, %v236_v5  ;;  %p1823_p0 = pneg %p1822_p13 }
  0x20   : > { %1357 = vmatprep.mubr.f32.mxu0 %v2001_v4 }
  0x92   : > { %v241_v6 = vpop.permute.xlu0 %240 }
  0xdf   : > { %v320_v7 = vpop.f32.mrf.mxu0 }
  0xe0   : > { %v321_v8 = vadd.f32 %v320_v7, %v241_v6 }
  0xe1   : > { %v322_v9 = vpop.f32.mrf.mxu0 }
  0xe2   : > { %v323_v10 = vadd.f32 %v322_v9, %v241_v6  ;;  %325 = vxpose.xlu0.b32.start.end [1/1] (short) %v321_v8, 128 }
  0xe4   : > { %357 = vxpose.xlu1.b32.start.end [1/1] (short) %v323_v10, 128  ;;  %1524 = vmatprep.subr.msk.mxu1 %vm249_vm0, %v323_v10 }
  0xe5   : > { %1525 = vmatpush1.msk.msra.mxu1 %vm249_vm0, %v321_v8 }
 0x15e   : > { %v341_v11 = vpop.trf.xlu0 }
 0x15f   : > { %1526 = vmatmul.mubr.msk.f32.vlgmr.msra.gmra.mxu1 %vm245_vm1, %v341_v11 }
 0x160   : > { %561 = vmatprep.mubr.f32.mxu1 %v1898_v0  ;;  %v373_v20 = vpop.trf.xlu1 }
 0x162   : > { %v342_v12 = vpop.trf.xlu0 }
 0x163   : > { %1527 = vmatmul.mubr.msk.f32.gmra.mxu1 %vm245_vm1, %v342_v12 }
 0x164   : > { %567 = vmatprep.mubr.f32.mxu1 %v1898_v0  ;;  %v374_v22 = vpop.trf.xlu1 }
 0x166   : > { %v343_v13 = vpop.trf.xlu0 }
 0x167   : > { %1528 = vmatmul.mubr.msk.f32.gmra.mxu1 %vm245_vm1, %v343_v13 }
 0x168   : > { %573 = vmatprep.mubr.f32.mxu1 %v1898_v0  ;;  %v375_v25 = vpop.trf.xlu1 }
 0x16a   : > { %v344_v14 = vpop.trf.xlu0 }
 0x16b   : > { %1529 = vmatmul.mubr.msk.f32.gmra.mxu1 %vm245_vm1, %v344_v14 }
 0x16c   : > { %579 = vmatprep.mubr.f32.mxu1 %v1898_v0  ;;  %v376_v27 = vpop.trf.xlu1 }
 0x16e   : > { %v345_v15 = vpop.trf.xlu0 }
 0x16f   : > { %1530 = vmatmul.mubr.msk.f32.gmra.mxu1 %vm245_vm1, %v345_v15 }
 0x170   : > { %585 = vmatprep.mubr.f32.mxu1 %v1898_v0  ;;  %v377_v30 = vpop.trf.xlu1 }
 0x172   : > { %v346_v16 = vpop.trf.xlu0 }
 0x173   : > { %1531 = vmatmul.mubr.msk.f32.gmra.mxu1 %vm245_vm1, %v346_v16 }
 0x174   : > { %591 = vmatprep.mubr.f32.mxu1 %v1898_v0  ;;  %v378_v32 = vpop.trf.xlu1 }
 0x176   : > { %v347_v17 = vpop.trf.xlu0 }
 0x177   : > { %1532 = vmatmul.mubr.msk.f32.gmra.mxu1 %vm245_vm1, %v347_v17 }
 0x178   : > { %597 = vmatprep.mubr.f32.mxu1 %v1898_v0  ;;  %v379_v33 = vpop.trf.xlu1 }
 0x17a   : > { %v348_v18 = vpop.trf.xlu0 }
 0x17b   : > { %1533 = vmatmul.mubr.msk.f32.gmra.mxu1 %vm245_vm1, %v348_v18 }
 0x17c   : > { %603 = vmatprep.mubr.f32.mxu1 %v1898_v0  ;;  %v380_v34 = vpop.trf.xlu1 }
 0x17e   : > { %v349_v19 = vpop.trf.xlu0 }
 0x17f   : > { %1534 = vmatmul.mubr.msk.f32.gmra.mxu1 %vm245_vm1, %v349_v19 }
 0x180   : > { %609 = vmatprep.mubr.f32.mxu1 %v1898_v0  ;;  %v381_v35 = vpop.trf.xlu1 }
 0x182   : > { %v350_v21 = vpop.trf.xlu0 }
 0x183   : > { %1535 = vmatmul.mubr.msk.f32.gmra.mxu1 %vm245_vm1, %v350_v21 }
 0x184   : > { %615 = vmatprep.mubr.f32.mxu1 %v1898_v0  ;;  %v382_v36 = vpop.trf.xlu1 }
 0x186   : > { %v351_v23 = vpop.trf.xlu0 }
 0x187   : > { %1536 = vmatmul.mubr.msk.f32.gmra.mxu1 %vm245_vm1, %v351_v23 }
 0x188   : > { %621 = vmatprep.mubr.f32.mxu1 %v1898_v0  ;;  %v383_v37 = vpop.trf.xlu1 }
 0x18a   : > { %v352_v24 = vpop.trf.xlu0 }
 0x18b   : > { %1537 = vmatmul.mubr.msk.f32.gmra.mxu1 %vm245_vm1, %v352_v24 }
 0x18c   : > { %627 = vmatprep.mubr.f32.mxu1 %v1898_v0  ;;  %v384_v38 = vpop.trf.xlu1 }
 0x18e   : > { %v353_v26 = vpop.trf.xlu0 }
 0x18f   : > { %1538 = vmatmul.mubr.msk.f32.gmra.mxu1 %vm245_vm1, %v353_v26 }
 0x190   : > { %633 = vmatprep.mubr.f32.mxu1 %v1898_v0  ;;  %v385_v39 = vpop.trf.xlu1 }
 0x192   : > { %v354_v28 = vpop.trf.xlu0 }
 0x193   : > { %1539 = vmatmul.mubr.msk.f32.gmra.mxu1 %vm245_vm1, %v354_v28 }
 0x194   : > { %639 = vmatprep.mubr.f32.mxu1 %v1898_v0  ;;  %v386_v40 = vpop.trf.xlu1 }
 0x196   : > { %v355_v29 = vpop.trf.xlu0 }
 0x197   : > { %1540 = vmatmul.mubr.msk.f32.gmra.mxu1 %vm245_vm1, %v355_v29 }
 0x198   : > { %645 = vmatprep.mubr.f32.mxu1 %v1898_v0  ;;  %v387_v41 = vpop.trf.xlu1 }
 0x19a   : > { %v356_v31 = vpop.trf.xlu0 }
 0x19b   : > { %1541 = vmatmul.mubr.msk.f32.gmra.mxu1 %vm245_vm1, %v356_v31 }
 0x19c   : > { %651 = vmatprep.mubr.f32.mxu1 %v1898_v0  ;;  %v388_v42 = vpop.trf.xlu1 }
 0x19f   : > { %1542 = vmatmul.mubr.msk.f32.gmra.mxu1 %vm245_vm1, %v373_v20 }
 0x1a0   : > { %657 = vmatprep.mubr.f32.mxu1 %v1898_v0 }
 0x1a3   : > { %1543 = vmatmul.mubr.msk.f32.gmra.mxu1 %vm245_vm1, %v374_v22 }
 0x1a4   : > { %663 = vmatprep.mubr.f32.mxu1 %v1898_v0 }
 0x1a7   : > { %1544 = vmatmul.mubr.msk.f32.gmra.mxu1 %vm245_vm1, %v375_v25 }
 0x1a8   : > { %669 = vmatprep.mubr.f32.mxu1 %v1898_v0 }
 0x1ab   : > { %1545 = vmatmul.mubr.msk.f32.gmra.mxu1 %vm245_vm1, %v376_v27 }
 0x1ac   : > { %675 = vmatprep.mubr.f32.mxu1 %v1898_v0 }
 0x1af   : > { %1546 = vmatmul.mubr.msk.f32.gmra.mxu1 %vm245_vm1, %v377_v30 }
 0x1b0   : > { %681 = vmatprep.mubr.f32.mxu1 %v1898_v0 }
 0x1b3   : > { %1547 = vmatmul.mubr.msk.f32.gmra.mxu1 %vm245_vm1, %v378_v32 }
 0x1b4   : > { %687 = vmatprep.mubr.f32.mxu1 %v1898_v0 }
 0x1b7   : > { %1548 = vmatmul.mubr.msk.f32.gmra.mxu1 %vm245_vm1, %v379_v33 }
 0x1b8   : > { %693 = vmatprep.mubr.f32.mxu1 %v1898_v0 }
 0x1bb   : > { %1549 = vmatmul.mubr.msk.f32.gmra.mxu1 %vm245_vm1, %v380_v34 }
 0x1bc   : > { %699 = vmatprep.mubr.f32.mxu1 %v1898_v0 }
 0x1bf   : > { %1550 = vmatmul.mubr.msk.f32.gmra.mxu1 %vm245_vm1, %v381_v35 }
 0x1c0   : > { %705 = vmatprep.mubr.f32.mxu1 %v1898_v0 }
 0x1c3   : > { %1551 = vmatmul.mubr.msk.f32.gmra.mxu1 %vm245_vm1, %v382_v36 }
 0x1c4   : > { %711 = vmatprep.mubr.f32.mxu1 %v1898_v0 }
 0x1c7   : > { %1552 = vmatmul.mubr.msk.f32.gmra.mxu1 %vm245_vm1, %v383_v37 }
 0x1c8   : > { %717 = vmatprep.mubr.f32.mxu1 %v1898_v0 }
 0x1cb   : > { %1553 = vmatmul.mubr.msk.f32.gmra.mxu1 %vm245_vm1, %v384_v38 }
 0x1cc   : > { %723 = vmatprep.mubr.f32.mxu1 %v1898_v0 }
 0x1cf   : > { %1554 = vmatmul.mubr.msk.f32.gmra.mxu1 %vm245_vm1, %v385_v39 }
 0x1d0   : > { %729 = vmatprep.mubr.f32.mxu1 %v1898_v0 }
 0x1d3   : > { %1555 = vmatmul.mubr.msk.f32.gmra.mxu1 %vm245_vm1, %v386_v40 }
 0x1d4   : > { %735 = vmatprep.mubr.f32.mxu1 %v1898_v0 }
 0x1d7   : > { %1556 = vmatmul.mubr.msk.f32.gmra.mxu1 %vm245_vm1, %v387_v41 }
 0x1d8   : > { %741 = vmatprep.mubr.f32.mxu1 %v1898_v0 }
 0x1db   : > { %1557 = vmatmul.mubr.msk.f32.gmra.mxu1 %vm245_vm1, %v388_v42 }
 0x21f   : > { %v2076_v43 = vpop.f32.mrf.mxu1 }
 0x220   : > { %2752 = vst [vmem:[#allocation6_spill] sm:$0xff] %v2076_v43 }
 0x221   : > { %v2078_v44 = vpop.f32.mrf.mxu1 }
 0x222   : > { %2753 = vst [vmem:[#allocation7_spill] sm:$0xff] %v2078_v44  ;;  %v748_v21 = vmax.f32 %v2076_v43, %v2078_v44 }
 0x223   : > { %v2080_v45 = vpop.f32.mrf.mxu1 }
 0x224   : > { %2754 = vst [vmem:[#allocation8_spill] sm:$0xff] %v2080_v45 }
 0x225   : > { %v2082_v46 = vpop.f32.mrf.mxu1 }
 0x226   : > { %2755 = vst [vmem:[#allocation9_spill] sm:$0xff] %v2082_v46 }
 0x227   : > { %v2084_v47 = vpop.f32.mrf.mxu1 }
 0x229   : > { %v2086_v48 = vpop.f32.mrf.mxu1 }
 0x22a   : > { %v754_v17 = vmax.f32 %v2084_v47, %v2086_v48 }
 0x22b   : > { %v2088_v49 = vpop.f32.mrf.mxu1 }
 0x22d   : > { %v2090_v50 = vpop.f32.mrf.mxu1 }
 0x22e   : > { %2756 = vst [vmem:[#allocation10_spill] sm:$0xff] %v2090_v50 }
 0x22f   : > { %v2092_v51 = vpop.f32.mrf.mxu1 }
 0x231   : > { %v2094_v52 = vpop.f32.mrf.mxu1 }
 0x232   : > { %v760_v13 = vmax.f32 %v2092_v51, %v2094_v52 }
 0x233   : > { %v2096_v53 = vpop.f32.mrf.mxu1 }
 0x235   : > { %v2098_v54 = vpop.f32.mrf.mxu1 }
 0x237   : > { %v2100_v55 = vpop.f32.mrf.mxu1 }
 0x239   : > { %v2102_v56 = vpop.f32.mrf.mxu1 }
 0x23a   : > { %v766_v40 = vmax.f32 %v2100_v55, %v2102_v56 }
 0x23b   : > { %v2104_v57 = vpop.f32.mrf.mxu1 }
 0x23d   : > { %v2106_v58 = vpop.f32.mrf.mxu1 }
 0x23e   : > { %v769_v37 = vmax.f32 %v2104_v57, %v2106_v58 }
 0x23f   : > { %v2108_v59 = vpop.f32.mrf.mxu1 }
 0x241   : > { %v2110_v60 = vpop.f32.mrf.mxu1 }
 0x242   : > { %v772_v34 = vmax.f32 %v2108_v59, %v2110_v60 }
 0x243   : > { %v2112_v61 = vpop.f32.mrf.mxu1 }
 0x245   : > { %v2114_v62 = vpop.f32.mrf.mxu1 }
 0x246   : > { %v775_v31 = vmax.f32 %v2112_v61, %v2114_v62 }
 0x247   : > { %v2116_v63 = vpop.f32.mrf.mxu1 }
 0x249   : > { %v2118_v0 = vpop.f32.mrf.mxu1 }
 0x24a   : > { %v778_v28 = vmax.f32 %v2116_v63, %v2118_v0 }
 0x24b   : > { %v2120_v1 = vpop.f32.mrf.mxu1 }
 0x24d   : > { %v2122_v2 = vpop.f32.mrf.mxu1 }
 0x24e   : > { %v781_v25 = vmax.f32 %v2120_v1, %v2122_v2 }
 0x24f   : > { %v2124_v3 = vpop.f32.mrf.mxu1 }
 0x251   : > { %v2126_v5 = vpop.f32.mrf.mxu1 }
 0x252   : > { %v784_v22 = vmax.f32 %v2124_v3, %v2126_v5 }
 0x253   : > { %v2128_v6 = vpop.f32.mrf.mxu1 }
 0x255   : > { %v2130_v7 = vpop.f32.mrf.mxu1 }
 0x256   : > { %v787_v18 = vmax.f32 %v2128_v6, %v2130_v7 }
 0x257   : > { %v2132_v8 = vpop.f32.mrf.mxu1 }
 0x259   : > { %v2134_v9 = vpop.f32.mrf.mxu1 }
 0x25a   : > { %v790_v10 = vmax.f32 %v2132_v8, %v2134_v9 }
 0x25b   : > { %v2138_v11 = vpop.f32.mrf.mxu1 }
 0x25c   : > { %791 = vmax.xlane.f32.xlu0 %v790_v10  ;;  %v763_v10 = vmax.f32 %v2096_v53, %v2098_v54 }
 0x25d   : > { %v2140_v12 = vpop.f32.mrf.mxu1 }
 0x25e   : > { %v793_v14 = vmax.f32 %v2138_v11, %v2140_v12 }
 0x25f   : > { %v2146_v15 = vpop.f32.mrf.mxu1 }
 0x260   : > { %761 = vmax.xlane.f32.xlu0 %v760_v13  ;;  %794 = vmax.xlane.f32.xlu1 %v793_v14 }
 0x261   : > { %v2148_v16 = vpop.f32.mrf.mxu1 }
 0x262   : > { %2757 = vst [vmem:[#allocation11_spill] sm:$0xff] %v2148_v16 }
 0x263   : > { %v2154_v19 = vpop.f32.mrf.mxu1 }
 0x264   : > { %755 = vmax.xlane.f32.xlu0 %v754_v17  ;;  %788 = vmax.xlane.f32.xlu1 %v787_v18  ;;  %v757_v17 = vmax.f32 %v2088_v49, %v2090_v50 }
 0x265   : > { %v2156_v20 = vpop.f32.mrf.mxu1 }
 0x266   : > { %2758 = vst [vmem:[#allocation12_spill] sm:$0xff] %v2156_v20 }
 0x267   : > { %v2162_v23 = vpop.f32.mrf.mxu1 }
 0x268   : > { %2759 = vst [vmem:[#allocation13_spill] sm:$0xff] %v2162_v23  ;;  %749 = vmax.xlane.f32.xlu0 %v748_v21  ;;  %785 = vmax.xlane.f32.xlu1 %v784_v22  ;;  %v751_v22 = vmax.f32 %v2080_v45, %v2082_v46 }
 0x269   : > { %v2164_v24 = vpop.f32.mrf.mxu1 }
 0x26a   : > { %2760 = vst [vmem:[#allocation14_spill] sm:$0xff] %v2164_v24 }
 0x26b   : > { %v2168_v26 = vpop.f32.mrf.mxu1 }
 0x26c   : > { %2761 = vst [vmem:[#allocation15_spill] sm:$0xff] %v2168_v26  ;;  %782 = vmax.xlane.f32.xlu1 %v781_v25 }
 0x26d   : > { %v2170_v27 = vpop.f32.mrf.mxu1 }
 0x26e   : > { %2762 = vst [vmem:[#allocation16_spill] sm:$0xff] %v2170_v27 }
 0x26f   : > { %v2174_v29 = vpop.f32.mrf.mxu1 }
 0x270   : > { %779 = vmax.xlane.f32.xlu1 %v778_v28 }
 0x271   : > { %v2176_v30 = vpop.f32.mrf.mxu1 }
 0x272   : > { %2763 = vst [vmem:[#allocation17_spill] sm:$0xff] %v2176_v30 }
 0x273   : > { %v2180_v32 = vpop.f32.mrf.mxu1 }
 0x274   : > { %776 = vmax.xlane.f32.xlu1 %v775_v31 }
 0x275   : > { %v2182_v33 = vpop.f32.mrf.mxu1 }
 0x276   : > { %2764 = vst [vmem:[#allocation18_spill] sm:$0xff] %v2182_v33 }
 0x277   : > { %v2186_v35 = vpop.f32.mrf.mxu1 }
 0x278   : > { %773 = vmax.xlane.f32.xlu1 %v772_v34 }
 0x279   : > { %v2188_v36 = vpop.f32.mrf.mxu1 }
 0x27b   : > { %v2192_v38 = vpop.f32.mrf.mxu1 }
 0x27c   : > { %770 = vmax.xlane.f32.xlu1 %v769_v37 }
 0x27d   : > { %v2194_v39 = vpop.f32.mrf.mxu1 }
 0x27f   : > { %v2198_v41 = vpop.f32.mrf.mxu1 }
 0x280   : > { %767 = vmax.xlane.f32.xlu1 %v766_v40 }
 0x281   : > { %v2200_v42 = vpop.f32.mrf.mxu1 }
 0x283   : > { %v2204_v13 = vpop.f32.mrf.mxu1 }
 0x284   : > { %764 = vmax.xlane.f32.xlu1 %v763_v10 }
 0x285   : > { %v2206_v14 = vpop.f32.mrf.mxu1 }
 0x287   : > { %v2210_v18 = vpop.f32.mrf.mxu1 }
 0x288   : > { %758 = vmax.xlane.f32.xlu1 %v757_v17 }
 0x289   : > { %v2212_v21 = vpop.f32.mrf.mxu1 }
 0x28a   : > { %v826_v43 = vmax.f32 %v2210_v18, %v2212_v21 }
 0x28b   : > { %v2216_v25 = vpop.f32.mrf.mxu1 }
 0x28c   : > { %752 = vmax.xlane.f32.xlu1 %v751_v22 }
 0x28d   : > { %v2218_v28 = vpop.f32.mrf.mxu1 }
 0x28f   : > { %v2220_v31 = vpop.f32.mrf.mxu1 }
 0x291   : > { %v2222_v34 = vpop.f32.mrf.mxu1 }
 0x292   : > { %v832_v45 = vmax.f32 %v2220_v31, %v2222_v34 }
 0x293   : > { %v2224_v37 = vpop.f32.mrf.mxu1 }
 0x295   : > { %v2226_v40 = vpop.f32.mrf.mxu1 }
 0x296   : > { %v835_v50 = vmax.f32 %v2224_v37, %v2226_v40 }
 0x297   : > { %v2228_v10 = vpop.f32.mrf.mxu1 }
 0x299   : > { %v2230_v17 = vpop.f32.mrf.mxu1 }
 0x29a   : > { %v838_v4 = vmax.f32 %v2228_v10, %v2230_v17 }
 0x29b   : > { %v2234_v44 = vpop.f32.mrf.mxu1 }
 0x29c   : > { %839 = vmax.xlane.f32.xlu0 %v838_v4  ;;  %v829_v4 = vmax.f32 %v2216_v25, %v2218_v28 }
 0x29d   : > { %v2236_v22 = vpop.f32.mrf.mxu1 }
 0x29e   : > { %2765 = vst [vmem:[#allocation19_spill] sm:$0xff] %v2236_v22  ;;  %v841_v46 = vmax.f32 %v2234_v44, %v2236_v22  ;;  %v823_v22 = vmax.f32 %v2204_v13, %v2206_v14 }
 0x2a0   : > { %833 = vmax.xlane.f32.xlu0 %v832_v45  ;;  %842 = vmax.xlane.f32.xlu1 %v841_v46  ;;  %v820_v45 = vmax.f32 %v2198_v41, %v2200_v42  ;;  %v817_v46 = vmax.f32 %v2192_v38, %v2194_v39 }
 0x2a4   : > { %827 = vmax.xlane.f32.xlu0 %v826_v43  ;;  %836 = vmax.xlane.f32.xlu1 %v835_v50  ;;  %v814_v43 = vmax.f32 %v2186_v35, %v2188_v36  ;;  %v811_v50 = vmax.f32 %v2180_v32, %v2182_v33 }
 0x2a8   : > { %830 = vmax.xlane.f32.xlu1 %v829_v4  ;;  %v808_v4 = vmax.f32 %v2174_v29, %v2176_v30 }
 0x2ac   : > { %824 = vmax.xlane.f32.xlu1 %v823_v22  ;;  %v805_v22 = vmax.f32 %v2168_v26, %v2170_v27 }
 0x2b0   : > { %821 = vmax.xlane.f32.xlu1 %v820_v45  ;;  %v802_v45 = vmax.f32 %v2162_v23, %v2164_v24 }
 0x2b4   : > { %818 = vmax.xlane.f32.xlu1 %v817_v46  ;;  %v799_v46 = vmax.f32 %v2154_v19, %v2156_v20 }
 0x2b8   : > { %815 = vmax.xlane.f32.xlu1 %v814_v43  ;;  %v796_v43 = vmax.f32 %v2146_v15, %v2148_v16 }
 0x2bc   : > { %812 = vmax.xlane.f32.xlu1 %v811_v50 }
 0x2c0   : > { %809 = vmax.xlane.f32.xlu1 %v808_v4 }
 0x2c4   : > { %806 = vmax.xlane.f32.xlu1 %v805_v22 }
 0x2c8   : > { %803 = vmax.xlane.f32.xlu1 %v802_v45 }
 0x2cc   : > { %800 = vmax.xlane.f32.xlu1 %v799_v46 }
 0x2d0   : > { %797 = vmax.xlane.f32.xlu1 %v796_v43 }
 0x2e5   : > { %v792_v50 = vpop.xlane.xlu0 %791 }
 0x2e6   : > { %v872_v4 = vsub.f32 %v2132_v8, %v792_v50  ;;  %v873_v22 = vsub.f32 %v2134_v9, %v792_v50 }
 0x2e8   : > { %v964_v26 = vmul.f32 1.442695, %v872_v4  ;;  %v966_v20 = vmul.f32 1.442695, %v873_v22 }
 0x2e9   : > { %v795_v33 = vpop.xlane.xlu1 %794 }
 0x2ea   : > { %v874_v30 = vsub.f32 %v2138_v11, %v795_v33  ;;  %v875_v27 = vsub.f32 %v2140_v12, %v795_v33 }
 0x2ec   : > { %v968_v24 = vmul.f32 1.442695, %v874_v30  ;;  %v970_v45 = vmul.f32 1.442695, %v875_v27 }
 0x2ed   : > { %v789_v23 = vpop.xlane.xlu1 %788 }
 0x2ee   : > { %v870_v46 = vsub.f32 %v2128_v6, %v789_v23  ;;  %v871_v16 = vsub.f32 %v2130_v7, %v789_v23  ;;  %1627 = vpow2.f32 %v968_v24 }
 0x2ef   : > { %1629 = vpow2.f32 %v970_v45 }
 0x2f0   : > { %1631 = vpow2.f32 %v964_v26  ;;  %v960_v8 = vmul.f32 1.442695, %v870_v46  ;;  %v962_v9 = vmul.f32 1.442695, %v871_v16 }
 0x2f1   : > { %v786_v43 = vpop.xlane.xlu1 %785  ;;  %1633 = vpow2.f32 %v966_v20 }
 0x2f2   : > { %v868_v11 = vsub.f32 %v2124_v3, %v786_v43  ;;  %v869_v12 = vsub.f32 %v2126_v5, %v786_v43  ;;  %1635 = vpow2.f32 %v960_v8 }
 0x2f3   : > { %1637 = vpow2.f32 %v962_v9 }
 0x2f4   : > { %v956_v27 = vmul.f32 1.442695, %v868_v11  ;;  %v958_v6 = vmul.f32 1.442695, %v869_v12 }
 0x2f5   : > { %v783_v30 = vpop.xlane.xlu1 %782 }
 0x2f6   : > { %v866_v33 = vsub.f32 %v2120_v1, %v783_v30  ;;  %v867_v7 = vsub.f32 %v2122_v2, %v783_v30  ;;  %1639 = vpow2.f32 %v956_v27 }
 0x2f7   : > { %1641 = vpow2.f32 %v958_v6 }
 0x2f8   : > { %v952_v24 = vmul.f32 1.442695, %v866_v33  ;;  %v954_v3 = vmul.f32 1.442695, %v867_v7 }
 0x2f9   : > { %v780_v23 = vpop.xlane.xlu1 %779 }
 0x2fa   : > { %v864_v26 = vsub.f32 %v2116_v63, %v780_v23  ;;  %v865_v16 = vsub.f32 %v2118_v0, %v780_v23  ;;  %1643 = vpow2.f32 %v952_v24 }
 0x2fb   : > { %v2280_v20 = vpop.eup %1627  ;;  %1645 = vpow2.f32 %v954_v3 }
 0x2fc   : > { %v2282_v50 = vpop.eup %1629  ;;  %v948_v1 = vmul.f32 1.442695, %v864_v26  ;;  %v950_v2 = vmul.f32 1.442695, %v865_v16 }
 0x2fd   : > { %v777_v5 = vpop.xlane.xlu1 %776  ;;  %v2285_v22 = vpop.eup %1631  ;;  %v1081_v63 = vadd.f32 %v2282_v50, %v2280_v20 }
 0x2fe   : > { %v862_v4 = vsub.f32 %v2112_v61, %v777_v5  ;;  %v863_v45 = vsub.f32 %v2114_v62, %v777_v5  ;;  %v2290_v46 = vpop.eup %1633  ;;  %1647 = vpow2.f32 %v948_v1 }
 0x2ff   : > { %1082 = vadd.xlane.f32.xlu0 %v1081_v63  ;;  %v2293_v11 = vpop.eup %1635  ;;  %1649 = vpow2.f32 %v950_v2  ;;  %v1078_v62 = vadd.f32 %v2290_v46, %v2285_v22 }
 0x300   : > { %v944_v43 = vmul.f32 1.442695, %v862_v4  ;;  %v946_v61 = vmul.f32 1.442695, %v863_v45  ;;  %v2298_v12 = vpop.eup %1637 }
 0x301   : > { %v774_v0 = vpop.xlane.xlu1 %773 }
 0x302   : > { %v860_v8 = vsub.f32 %v2108_v59, %v774_v0  ;;  %v861_v9 = vsub.f32 %v2110_v60, %v774_v0  ;;  %1651 = vpow2.f32 %v944_v43  ;;  %v762_v59 = vpop.xlane.xlu0 %761  ;;  %v1075_v60 = vadd.f32 %v2298_v12, %v2293_v11 }
 0x303   : > { %1079 = vadd.xlane.f32.xlu0 %v1078_v62  ;;  %v2301_v6 = vpop.eup %1639  ;;  %1653 = vpow2.f32 %v946_v61  ;;  %v852_v1 = vsub.f32 %v2092_v51, %v762_v59  ;;  %v853_v63 = vsub.f32 %v2094_v52, %v762_v59 }
 0x304   : > { %v940_v27 = vmul.f32 1.442695, %v860_v8  ;;  %v942_v7 = vmul.f32 1.442695, %v861_v9  ;;  %v2306_v24 = vpop.eup %1641 }
 0x305   : > { %v771_v30 = vpop.xlane.xlu1 %770  ;;  %v924_v61 = vmul.f32 1.442695, %v852_v1 }
 0x306   : > { %v858_v33 = vsub.f32 %v2104_v57, %v771_v30  ;;  %v859_v23 = vsub.f32 %v2106_v58, %v771_v30  ;;  %1655 = vpow2.f32 %v940_v27  ;;  %v1072_v58 = vadd.f32 %v2306_v24, %v2301_v6  ;;  %v756_v0 = vpop.xlane.xlu0 %755 }
 0x307   : > { %1076 = vadd.xlane.f32.xlu0 %v1075_v60  ;;  %v2310_v5 = vpop.eup %1643  ;;  %1657 = vpow2.f32 %v942_v7  ;;  %v848_v52 = vsub.f32 %v2084_v47, %v756_v0  ;;  %v849_v59 = vsub.f32 %v2086_v48, %v756_v0  ;;  %v2766_v7 = vld [vmem:[#allocation10_spill] sm:$0xff]  ;;  %v2769_v0 = vld [vmem:[#allocation9_spill] sm:$0xff] }
 0x308   : > { %v936_v3 = vmul.f32 1.442695, %v858_v33  ;;  %v938_v4 = vmul.f32 1.442695, %v859_v23  ;;  %v2315_v2 = vpop.eup %1645  ;;  %v926_v33 = vmul.f32 1.442695, %v853_v63 }
 0x309   : > { %v768_v26 = vpop.xlane.xlu1 %767  ;;  %v1069_v9 = vadd.f32 %v2315_v2, %v2310_v5  ;;  %v918_v1 = vmul.f32 1.442695, %v849_v59 }
 0x30a   : > { %v856_v16 = vsub.f32 %v2100_v55, %v768_v26  ;;  %v857_v57 = vsub.f32 %v2102_v56, %v768_v26  ;;  %1659 = vpow2.f32 %v936_v3  ;;  %v750_v26 = vpop.xlane.xlu0 %749 }
 0x30b   : > { %1073 = vadd.xlane.f32.xlu0 %v1072_v58  ;;  %v2320_v51 = vpop.eup %1647  ;;  %1661 = vpow2.f32 %v938_v4 }
 0x30c   : > { %v932_v45 = vmul.f32 1.442695, %v856_v16  ;;  %v934_v43 = vmul.f32 1.442695, %v857_v57  ;;  %v2324_v62 = vpop.eup %1649  ;;  %v916_v16 = vmul.f32 1.442695, %v848_v52 }
 0x30d   : > { %v765_v55 = vpop.xlane.xlu1 %764  ;;  %v1066_v47 = vadd.f32 %v2324_v62, %v2320_v51 }
 0x30e   : > { %v854_v56 = vsub.f32 %v2096_v53, %v765_v55  ;;  %v855_v8 = vsub.f32 %v2098_v54, %v765_v55  ;;  %1663 = vpow2.f32 %v932_v45  ;;  %v2768_v45 = vld [vmem:[#allocation8_spill] sm:$0xff] }
 0x30f   : > { %1665 = vpow2.f32 %v934_v43  ;;  %1070 = vadd.xlane.f32.xlu0 %v1069_v9  ;;  %v2330_v60 = vpop.eup %1651 }
 0x310   : > { %v928_v30 = vmul.f32 1.442695, %v854_v56  ;;  %v930_v27 = vmul.f32 1.442695, %v855_v8  ;;  %v2334_v3 = vpop.eup %1653  ;;  %v2770_v56 = vld [vmem:[#allocation7_spill] sm:$0xff] }
 0x311   : > { %v759_v53 = vpop.xlane.xlu1 %758  ;;  %v845_v8 = vsub.f32 %v2770_v56, %v750_v26 }
 0x312   : > { %1667 = vpow2.f32 %v928_v30  ;;  %v850_v54 = vsub.f32 %v2088_v49, %v759_v53  ;;  %v851_v23 = vsub.f32 %v2766_v7, %v759_v53  ;;  %v2767_v49 = vld [vmem:[#allocation6_spill] sm:$0xff] }
 0x313   : > { %1669 = vpow2.f32 %v930_v27  ;;  %1067 = vadd.xlane.f32.xlu0 %v1066_v47  ;;  %v844_v58 = vsub.f32 %v2767_v49, %v750_v26  ;;  %v2339_v55 = vpop.eup %1655  ;;  %v910_v59 = vmul.f32 1.442695, %v845_v8 }
 0x314   : > { %1671 = vpow2.f32 %v924_v61  ;;  %v920_v48 = vmul.f32 1.442695, %v850_v54  ;;  %v922_v57 = vmul.f32 1.442695, %v851_v23  ;;  %v1063_v61 = vadd.f32 %v2334_v3, %v2330_v60  ;;  %v2344_v9 = vpop.eup %1657 }
 0x315   : > { %1673 = vpow2.f32 %v926_v33  ;;  %v753_v4 = vpop.xlane.xlu1 %752  ;;  %v908_v27 = vmul.f32 1.442695, %v844_v58  ;;  %v1060_v53 = vadd.f32 %v2344_v9, %v2339_v55 }
 0x316   : > { %1675 = vpow2.f32 %v920_v48  ;;  %v846_v63 = vsub.f32 %v2768_v45, %v753_v4  ;;  %v847_v43 = vsub.f32 %v2769_v0, %v753_v4 }
 0x317   : > { %1677 = vpow2.f32 %v922_v57  ;;  %1064 = vadd.xlane.f32.xlu0 %v1063_v61  ;;  %v2346_v33 = vpop.eup %1659 }
 0x318   : > { %1679 = vpow2.f32 %v916_v16  ;;  %v912_v52 = vmul.f32 1.442695, %v846_v63  ;;  %v914_v30 = vmul.f32 1.442695, %v847_v43  ;;  %v2350_v54 = vpop.eup %1661 }
 0x319   : > { %1681 = vpow2.f32 %v918_v1  ;;  %v1057_v47 = vadd.f32 %v2350_v54, %v2346_v33 }
 0x31a   : > { %1683 = vpow2.f32 %v912_v52 }
 0x31b   : > { %1685 = vpow2.f32 %v914_v30  ;;  %v2352_v7 = vpop.eup %1663  ;;  %1061 = vadd.xlane.f32.xlu0 %v1060_v53 }
 0x31c   : > { %v2354_v23 = vpop.eup %1665  ;;  %1687 = vpow2.f32 %v908_v27 }
 0x31d   : > { %1689 = vpow2.f32 %v910_v59  ;;  %v1054_v49 = vadd.f32 %v2354_v23, %v2352_v7 }
 0x31f   : > { %v2356_v26 = vpop.eup %1667  ;;  %1058 = vadd.xlane.f32.xlu0 %v1057_v47 }
 0x320   : > { %v2360_v16 = vpop.eup %1669 }
 0x321   : > { %v2362_v48 = vpop.eup %1671  ;;  %v1051_v57 = vadd.f32 %v2360_v16, %v2356_v26 }
 0x322   : > { %2771 = vst [vmem:[#allocation10_spill] sm:$0xff] %v2362_v48  ;;  %v2366_v1 = vpop.eup %1673 }
 0x323   : > { %v2368_v4 = vpop.eup %1675  ;;  %1052 = vadd.xlane.f32.xlu1 %v1051_v57  ;;  %1055 = vadd.xlane.f32.xlu0 %v1054_v49  ;;  %v1048_v52 = vadd.f32 %v2366_v1, %v2362_v48 }
 0x324   : > { %v2372_v58 = vpop.eup %1677 }
 0x325   : > { %v2374_v45 = vpop.eup %1679  ;;  %v840_v63 = vpop.xlane.xlu0 %839  ;;  %v1045_v0 = vadd.f32 %v2372_v58, %v2368_v4 }
 0x326   : > { %v2378_v43 = vpop.eup %1681  ;;  %v904_v56 = vsub.f32 %v2228_v10, %v840_v63  ;;  %v905_v8 = vsub.f32 %v2230_v17, %v840_v63 }
 0x327   : > { %v2382_v61 = vpop.eup %1683  ;;  %1046 = vadd.xlane.f32.xlu1 %v1045_v0  ;;  %1049 = vadd.xlane.f32.xlu0 %v1048_v52  ;;  %v2774_v0 = vld [vmem:[#allocation19_spill] sm:$0xff] }
 0x328   : > { %2772 = vst [vmem:[#allocation6_spill] sm:$0xff] %v2382_v61  ;;  %v2386_v30 = vpop.eup %1685  ;;  %v1028_v27 = vmul.f32 1.442695, %v904_v56  ;;  %v1030_v59 = vmul.f32 1.442695, %v905_v8  ;;  %v1042_v56 = vadd.f32 %v2378_v43, %v2374_v45 }
 0x329   : > { %2773 = vst [vmem:[#allocation8_spill] sm:$0xff] %v2386_v30  ;;  %v834_v53 = vpop.xlane.xlu0 %833  ;;  %v843_v47 = vpop.xlane.xlu1 %842  ;;  %v1039_v57 = vadd.f32 %v2386_v30, %v2382_v61 }
 0x32a   : > { %1691 = vpow2.f32 %v1028_v27  ;;  %v900_v10 = vsub.f32 %v2220_v31, %v834_v53  ;;  %v901_v17 = vsub.f32 %v2222_v34, %v834_v53  ;;  %v906_v49 = vsub.f32 %v2234_v44, %v843_v47  ;;  %v2393_v63 = vpop.eup %1687 }
 0x32b   : > { %1693 = vpow2.f32 %v1030_v59  ;;  %v907_v48 = vsub.f32 %v2774_v0, %v843_v47  ;;  %1040 = vadd.xlane.f32.xlu1 %v1039_v57  ;;  %v2398_v8 = vpop.eup %1689  ;;  %1043 = vadd.xlane.f32.xlu0 %v1042_v56 }
 0x32c   : > { %v1020_v52 = vmul.f32 1.442695, %v900_v10  ;;  %v1022_v61 = vmul.f32 1.442695, %v901_v17  ;;  %v1032_v27 = vmul.f32 1.442695, %v906_v49  ;;  %v1036_v57 = vadd.f32 %v2398_v8, %v2393_v63 }
 0x32d   : > { %v1034_v30 = vmul.f32 1.442695, %v907_v48  ;;  %v828_v31 = vpop.xlane.xlu0 %827  ;;  %v837_v34 = vpop.xlane.xlu1 %836 }
 0x32e   : > { %1695 = vpow2.f32 %v1020_v52  ;;  %v896_v44 = vsub.f32 %v2210_v18, %v828_v31  ;;  %v897_v59 = vsub.f32 %v2212_v21, %v828_v31  ;;  %v902_v53 = vsub.f32 %v2224_v37, %v837_v34 }
 0x32f   : > { %1697 = vpow2.f32 %v1022_v61  ;;  %v903_v47 = vsub.f32 %v2226_v40, %v837_v34  ;;  %1037 = vadd.xlane.f32.xlu0 %v1036_v57 }
 0x330   : > { %1699 = vpow2.f32 %v1032_v27  ;;  %v1012_v10 = vmul.f32 1.442695, %v896_v44  ;;  %v1014_v17 = vmul.f32 1.442695, %v897_v59  ;;  %v1024_v48 = vmul.f32 1.442695, %v902_v53 }
 0x331   : > { %1701 = vpow2.f32 %v1034_v30  ;;  %v1026_v49 = vmul.f32 1.442695, %v903_v47  ;;  %v831_v0 = vpop.xlane.xlu1 %830 }
 0x332   : > { %1703 = vpow2.f32 %v1012_v10  ;;  %v898_v18 = vsub.f32 %v2216_v25, %v831_v0  ;;  %v899_v21 = vsub.f32 %v2218_v28, %v831_v0 }
 0x333   : > { %1705 = vpow2.f32 %v1014_v17 }
 0x334   : > { %1707 = vpow2.f32 %v1024_v48  ;;  %v1016_v37 = vmul.f32 1.442695, %v898_v18  ;;  %v1018_v40 = vmul.f32 1.442695, %v899_v21 }
 0x335   : > { %1709 = vpow2.f32 %v1026_v49  ;;  %v825_v61 = vpop.xlane.xlu1 %824 }
 0x336   : > { %1711 = vpow2.f32 %v1016_v37  ;;  %v894_v56 = vsub.f32 %v2204_v13, %v825_v61  ;;  %v895_v52 = vsub.f32 %v2206_v14, %v825_v61 }
 0x337   : > { %v2410_v30 = vpop.eup %1691  ;;  %1713 = vpow2.f32 %v1018_v40 }
 0x338   : > { %v2412_v27 = vpop.eup %1693  ;;  %v1008_v31 = vmul.f32 1.442695, %v894_v56  ;;  %v1010_v25 = vmul.f32 1.442695, %v895_v52 }
 0x339   : > { %v822_v34 = vpop.xlane.xlu1 %821  ;;  %v1126_v28 = vadd.f32 %v2412_v27, %v2410_v30 }
 0x33a   : > { %1715 = vpow2.f32 %v1008_v31  ;;  %v892_v44 = vsub.f32 %v2198_v41, %v822_v34  ;;  %v893_v59 = vsub.f32 %v2200_v42, %v822_v34 }
 0x33b   : > { %v2418_v53 = vpop.eup %1695  ;;  %1717 = vpow2.f32 %v1010_v25  ;;  %1127 = vadd.xlane.f32.xlu0 %v1126_v28 }
 0x33c   : > { %v2420_v13 = vpop.eup %1697  ;;  %v1004_v14 = vmul.f32 1.442695, %v892_v44  ;;  %v1006_v47 = vmul.f32 1.442695, %v893_v59 }
 0x33d   : > { %v2422_v57 = vpop.eup %1699  ;;  %v819_v10 = vpop.xlane.xlu1 %818  ;;  %v1120_v17 = vadd.f32 %v2420_v13, %v2418_v53 }
 0x33e   : > { %v2426_v48 = vpop.eup %1701  ;;  %1719 = vpow2.f32 %v1004_v14  ;;  %v890_v41 = vsub.f32 %v2192_v38, %v819_v10  ;;  %v891_v42 = vsub.f32 %v2194_v39, %v819_v10 }
 0x33f   : > { %v2430_v49 = vpop.eup %1703  ;;  %1721 = vpow2.f32 %v1006_v47  ;;  %1121 = vadd.xlane.f32.xlu0 %v1120_v17  ;;  %v1129_v0 = vadd.f32 %v2426_v48, %v2422_v57 }
 0x340   : > { %v2434_v18 = vpop.eup %1705  ;;  %v1000_v21 = vmul.f32 1.442695, %v890_v41  ;;  %v1002_v37 = vmul.f32 1.442695, %v891_v42 }
 0x341   : > { %v2436_v40 = vpop.eup %1707  ;;  %1130 = vadd.xlane.f32.xlu1 %v1129_v0  ;;  %v816_v61 = vpop.xlane.xlu1 %815  ;;  %v1114_v38 = vadd.f32 %v2434_v18, %v2430_v49 }
 0x342   : > { %v2440_v56 = vpop.eup %1709  ;;  %1723 = vpow2.f32 %v1000_v21  ;;  %v888_v39 = vsub.f32 %v2186_v35, %v816_v61  ;;  %v889_v52 = vsub.f32 %v2188_v36, %v816_v61  ;;  %v2775_v36 = vld [vmem:[#allocation18_spill] sm:$0xff]  ;;  %v2776_v61 = vld [vmem:[#allocation17_spill] sm:$0xff] }
 0x343   : > { %v2444_v31 = vpop.eup %1711  ;;  %1725 = vpow2.f32 %v1002_v37  ;;  %1115 = vadd.xlane.f32.xlu0 %v1114_v38  ;;  %v1123_v25 = vadd.f32 %v2440_v56, %v2436_v40 }
 0x344   : > { %v2448_v34 = vpop.eup %1713  ;;  %v996_v28 = vmul.f32 1.442695, %v888_v39  ;;  %v998_v44 = vmul.f32 1.442695, %v889_v52 }
 0x345   : > { %1124 = vadd.xlane.f32.xlu1 %v1123_v25  ;;  %v813_v59 = vpop.xlane.xlu1 %812  ;;  %v1117_v14 = vadd.f32 %v2448_v34, %v2444_v31 }
 0x346   : > { %1727 = vpow2.f32 %v996_v28  ;;  %v886_v35 = vsub.f32 %v2180_v32, %v813_v59  ;;  %v887_v47 = vsub.f32 %v2775_v36, %v813_v59  ;;  %v2777_v59 = vld [vmem:[#allocation15_spill] sm:$0xff] }
 0x347   : > { %v2454_v10 = vpop.eup %1715  ;;  %1729 = vpow2.f32 %v998_v44 }
 0x348   : > { %v2456_v17 = vpop.eup %1717  ;;  %v992_v41 = vmul.f32 1.442695, %v886_v35  ;;  %v994_v42 = vmul.f32 1.442695, %v887_v47  ;;  %v2778_v35 = vld [vmem:[#allocation16_spill] sm:$0xff] }
 0x349   : > { %1118 = vadd.xlane.f32.xlu1 %v1117_v14  ;;  %v810_v0 = vpop.xlane.xlu1 %809  ;;  %v1111_v21 = vadd.f32 %v2456_v17, %v2454_v10 }
 0x34a   : > { %1731 = vpow2.f32 %v992_v41  ;;  %v884_v37 = vsub.f32 %v2174_v29, %v810_v0  ;;  %v885_v38 = vsub.f32 %v2776_v61, %v810_v0 }
 0x34b   : > { %v2462_v32 = vpop.eup %1719  ;;  %1733 = vpow2.f32 %v994_v42 }
 0x34c   : > { %v2464_v39 = vpop.eup %1721  ;;  %v988_v52 = vmul.f32 1.442695, %v884_v37  ;;  %v990_v25 = vmul.f32 1.442695, %v885_v38  ;;  %v2780_v37 = vld [vmem:[#allocation13_spill] sm:$0xff]  ;;  %v2781_v38 = vld [vmem:[#allocation14_spill] sm:$0xff] }
 0x34d   : > { %1112 = vadd.xlane.f32.xlu1 %v1111_v21  ;;  %v807_v28 = vpop.xlane.xlu1 %806  ;;  %v1108_v44 = vadd.f32 %v2464_v39, %v2462_v32 }
 0x34e   : > { %1735 = vpow2.f32 %v988_v52  ;;  %v882_v14 = vsub.f32 %v2777_v59, %v807_v28  ;;  %v883_v36 = vsub.f32 %v2778_v35, %v807_v28 }
 0x34f   : > { %v2470_v29 = vpop.eup %1723  ;;  %1737 = vpow2.f32 %v990_v25  ;;  %1109 = vadd.xlane.f32.xlu0 %v1108_v44 }
 0x350   : > { %2779 = vst [vmem:[#allocation9_spill] sm:$0xff] %v2470_v29  ;;  %v2472_v47 = vpop.eup %1725  ;;  %v984_v41 = vmul.f32 1.442695, %v882_v14  ;;  %v986_v42 = vmul.f32 1.442695, %v883_v36 }
 0x351   : > { %v804_v0 = vpop.xlane.xlu1 %803  ;;  %v1105_v21 = vadd.f32 %v2472_v47, %v2470_v29 }
 0x352   : > { %1739 = vpow2.f32 %v984_v41  ;;  %v880_v61 = vsub.f32 %v2780_v37, %v804_v0  ;;  %v881_v52 = vsub.f32 %v2781_v38, %v804_v0  ;;  %v2783_v41 = vld [vmem:[#allocation12_spill] sm:$0xff] }
 0x353   : > { %v2478_v59 = vpop.eup %1727  ;;  %1741 = vpow2.f32 %v986_v42  ;;  %1106 = vadd.xlane.f32.xlu1 %v1105_v21 }
 0x354   : > { %2782 = vst [vmem:[#allocation7_spill] sm:$0xff] %v2478_v59  ;;  %v2480_v28 = vpop.eup %1729  ;;  %v980_v25 = vmul.f32 1.442695, %v880_v61  ;;  %v982_v44 = vmul.f32 1.442695, %v881_v52 }
 0x355   : > { %v801_v35 = vpop.xlane.xlu1 %800  ;;  %v1102_v14 = vadd.f32 %v2480_v28, %v2478_v59 }
 0x356   : > { %1743 = vpow2.f32 %v980_v25  ;;  %v878_v36 = vsub.f32 %v2154_v19, %v801_v35  ;;  %v879_v29 = vsub.f32 %v2783_v41, %v801_v35  ;;  %v2784_v25 = vld [vmem:[#allocation11_spill] sm:$0xff] }
 0x357   : > { %v2486_v37 = vpop.eup %1731  ;;  %1745 = vpow2.f32 %v982_v44  ;;  %1103 = vadd.xlane.f32.xlu0 %v1102_v14 }
 0x358   : > { %v2488_v0 = vpop.eup %1733  ;;  %v976_v42 = vmul.f32 1.442695, %v878_v36  ;;  %v978_v21 = vmul.f32 1.442695, %v879_v29 }
 0x359   : > { %v798_v38 = vpop.xlane.xlu1 %797  ;;  %v1099_v61 = vadd.f32 %v2488_v0, %v2486_v37 }
 0x35a   : > { %1747 = vpow2.f32 %v976_v42  ;;  %v876_v52 = vsub.f32 %v2146_v15, %v798_v38  ;;  %v877_v59 = vsub.f32 %v2784_v25, %v798_v38 }
 0x35b   : > { %v2494_v19 = vpop.eup %1735  ;;  %1749 = vpow2.f32 %v978_v21  ;;  %1100 = vadd.xlane.f32.xlu1 %v1099_v61 }
 0x35c   : > { %v2496_v35 = vpop.eup %1737  ;;  %v972_v44 = vmul.f32 1.442695, %v876_v52  ;;  %v974_v14 = vmul.f32 1.442695, %v877_v59 }
 0x35d   : > { %v1096_v29 = vadd.f32 %v2496_v35, %v2494_v19 }
 0x35e   : > { %1751 = vpow2.f32 %v972_v44 }
 0x35f   : > { %v2500_v36 = vpop.eup %1739  ;;  %1753 = vpow2.f32 %v974_v14  ;;  %1097 = vadd.xlane.f32.xlu0 %v1096_v29 }
 0x360   : > { %v2502_v41 = vpop.eup %1741 }
 0x361   : > { %v1093_v15 = vadd.f32 %v2502_v41, %v2500_v36 }
 0x363   : > { %v2506_v42 = vpop.eup %1743  ;;  %1094 = vadd.xlane.f32.xlu1 %v1093_v15 }
 0x364   : > { %2785 = vst [vmem:[#allocation19_spill] sm:$0xff] %v2506_v42  ;;  %v2508_v21 = vpop.eup %1745 }
 0x365   : > { %2786 = vst [vmem:[#allocation18_spill] sm:$0xff] %v2508_v21  ;;  %v1090_v59 = vadd.f32 %v2508_v21, %v2506_v42 }
 0x367   : > { %v2512_v38 = vpop.eup %1747  ;;  %1091 = vadd.xlane.f32.xlu0 %v1090_v59 }
 0x368   : > { %2787 = vst [vmem:[#allocation17_spill] sm:$0xff] %v2512_v38  ;;  %v2514_v61 = vpop.eup %1749 }
 0x369   : > { %2788 = vst [vmem:[#allocation15_spill] sm:$0xff] %v2514_v61  ;;  %v1087_v52 = vadd.f32 %v2514_v61, %v2512_v38 }
 0x36b   : > { %v2518_v25 = vpop.eup %1751  ;;  %1088 = vadd.xlane.f32.xlu1 %v1087_v52 }
 0x36c   : > { %v2520_v44 = vpop.eup %1753 }
 0x36d   : > { %v1084_v14 = vadd.f32 %v2520_v44, %v2518_v25 }
 0x36f   : > { %1085 = vadd.xlane.f32.xlu0 %v1084_v14 }
 0x388   : > { %v1083_v29 = vpop.xlane.xlu0 %1082 }
 0x389   : > { %1755 = vrcp.f32 %v1083_v29 }
 0x38c   : > { %v1080_v15 = vpop.xlane.xlu0 %1079 }
 0x38d   : > { %1757 = vrcp.f32 %v1080_v15 }
 0x390   : > { %v1077_v42 = vpop.xlane.xlu0 %1076 }
 0x391   : > { %1759 = vrcp.f32 %v1077_v42 }
 0x394   : > { %v1074_v59 = vpop.xlane.xlu0 %1073 }
 0x395   : > { %1761 = vrcp.f32 %v1074_v59 }
 0x396   : > { %v1756_v38 = vpop.eup %1755 }
 0x397   : > { %v1195_v52 = vmul.f32 %v1756_v38, %v2282_v50  ;;  %v1194_v61 = vmul.f32 %v1756_v38, %v2280_v20 }
 0x398   : > { %v1071_v21 = vpop.xlane.xlu0 %1070 }
 0x399   : > { %1763 = vrcp.f32 %v1071_v21  ;;  %1259 = vst [vmem:[%s2529_s14 + $0xf8] sm:$0xff] %v1195_v52  ;;  %1293 = vmatprep.subr.mxu0 %v1195_v52  ;;  %1258 = vst [vmem:[%s2529_s14 + $0xf0] sm:$0xff] %v1194_v61 }
 0x39a   : > { %v1758_v42 = vpop.eup %1757  ;;  %1294 = vmatpush1.xpose.msra.mxu0 %v1194_v61 }
 0x39b   : > { %v1193_v14 = vmul.f32 %v1758_v42, %v2290_v46  ;;  %v1192_v50 = vmul.f32 %v1758_v42, %v2285_v22 }
 0x39c   : > { %v1068_v20 = vpop.xlane.xlu0 %1067 }
 0x39d   : > { %1765 = vrcp.f32 %v1068_v20  ;;  %1257 = vst [vmem:[%s2529_s14 + $0xe8] sm:$0xff] %v1193_v14  ;;  %1295 = vmatprep.subr.mxu0 %v1193_v14  ;;  %1256 = vst [vmem:[%s2529_s14 + $0xe0] sm:$0xff] %v1192_v50 }
 0x39e   : > { %v1760_v21 = vpop.eup %1759  ;;  %1296 = vmatpush1.xpose.msra.mxu0 %v1192_v50 }
 0x39f   : > { %v1191_v38 = vmul.f32 %v1760_v21, %v2298_v12  ;;  %v1190_v29 = vmul.f32 %v1760_v21, %v2293_v11 }
 0x3a0   : > { %v1065_v15 = vpop.xlane.xlu0 %1064 }
 0x3a1   : > { %1767 = vrcp.f32 %v1065_v15  ;;  %1255 = vst [vmem:[%s2529_s14 + $0xd8] sm:$0xff] %v1191_v38  ;;  %1297 = vmatprep.subr.mxu0 %v1191_v38  ;;  %1254 = vst [vmem:[%s2529_s14 + $0xd0] sm:$0xff] %v1190_v29 }
 0x3a2   : > { %v1762_v22 = vpop.eup %1761  ;;  %1298 = vmatpush1.xpose.msra.mxu0 %v1190_v29 }
 0x3a3   : > { %v1189_v46 = vmul.f32 %v1762_v22, %v2306_v24  ;;  %v1188_v61 = vmul.f32 %v1762_v22, %v2301_v6 }
 0x3a4   : > { %v1062_v59 = vpop.xlane.xlu0 %1061 }
 0x3a5   : > { %1769 = vrcp.f32 %v1062_v59  ;;  %1253 = vst [vmem:[%s2529_s14 + $0xc8] sm:$0xff] %v1189_v46  ;;  %1299 = vmatprep.subr.mxu0 %v1189_v46  ;;  %1252 = vst [vmem:[%s2529_s14 + $0xc0] sm:$0xff] %v1188_v61 }
 0x3a6   : > { %v1764_v12 = vpop.eup %1763  ;;  %1300 = vmatpush1.xpose.msra.mxu0 %v1188_v61 }
 0x3a7   : > { %v1187_v11 = vmul.f32 %v1764_v12, %v2315_v2  ;;  %v1186_v52 = vmul.f32 %v1764_v12, %v2310_v5 }
 0x3a8   : > { %v1059_v42 = vpop.xlane.xlu0 %1058 }
 0x3a9   : > { %1771 = vrcp.f32 %v1059_v42  ;;  %1251 = vst [vmem:[%s2529_s14 + $0xb8] sm:$0xff] %v1187_v11  ;;  %1301 = vmatprep.subr.mxu0 %v1187_v11  ;;  %1250 = vst [vmem:[%s2529_s14 + $0xb0] sm:$0xff] %v1186_v52 }
 0x3aa   : > { %v1766_v24 = vpop.eup %1765  ;;  %1302 = vmatpush1.xpose.msra.mxu0 %v1186_v52 }
 0x3ab   : > { %v1185_v14 = vmul.f32 %v1766_v24, %v2324_v62  ;;  %v1184_v50 = vmul.f32 %v1766_v24, %v2320_v51  ;;  %v2789_v24 = vld [vmem:[#allocation10_spill] sm:$0xff] }
 0x3ac   : > { %v1053_v6 = vpop.xlane.xlu1 %1052  ;;  %v1056_v20 = vpop.xlane.xlu0 %1055 }
 0x3ad   : > { %1773 = vrcp.f32 %v1053_v6  ;;  %1249 = vst [vmem:[%s2529_s14 + $0xa8] sm:$0xff] %v1185_v14  ;;  %1303 = vmatprep.subr.mxu0 %v1185_v14  ;;  %1248 = vst [vmem:[%s2529_s14 + $0xa0] sm:$0xff] %v1184_v50  ;;  %v2790_v14 = vld [vmem:[#allocation8_spill] sm:$0xff] }
 0x3ae   : > { %1775 = vrcp.f32 %v1056_v20  ;;  %v1768_v5 = vpop.eup %1767  ;;  %1304 = vmatpush1.xpose.msra.mxu0 %v1184_v50  ;;  %v2791_v50 = vld [vmem:[#allocation6_spill] sm:$0xff] }
 0x3af   : > { %v1183_v21 = vmul.f32 %v1768_v5, %v2334_v3  ;;  %v1182_v38 = vmul.f32 %v1768_v5, %v2330_v60 }
 0x3b0   : > { %v1047_v2 = vpop.xlane.xlu1 %1046  ;;  %v1050_v29 = vpop.xlane.xlu0 %1049 }
 0x3b1   : > { %1777 = vrcp.f32 %v1047_v2  ;;  %1247 = vst [vmem:[%s2529_s14 + $0x98] sm:$0xff] %v1183_v21  ;;  %1305 = vmatprep.subr.mxu0 %v1183_v21  ;;  %1246 = vst [vmem:[%s2529_s14 + $0x90] sm:$0xff] %v1182_v38 }
 0x3b2   : > { %1779 = vrcp.f32 %v1050_v29  ;;  %v1770_v51 = vpop.eup %1769  ;;  %1306 = vmatpush1.xpose.msra.mxu0 %v1182_v38 }
 0x3b3   : > { %v1181_v15 = vmul.f32 %v1770_v51, %v2344_v9  ;;  %v1180_v22 = vmul.f32 %v1770_v51, %v2339_v55 }
 0x3b4   : > { %v1041_v62 = vpop.xlane.xlu1 %1040  ;;  %v1044_v46 = vpop.xlane.xlu0 %1043 }
 0x3b5   : > { %1781 = vrcp.f32 %v1041_v62  ;;  %1245 = vst [vmem:[%s2529_s14 + $0x88] sm:$0xff] %v1181_v15  ;;  %1307 = vmatprep.subr.mxu0 %v1181_v15  ;;  %1244 = vst [vmem:[%s2529_s14 + $0x80] sm:$0xff] %v1180_v22 }
 0x3b6   : > { %1783 = vrcp.f32 %v1044_v46  ;;  %v1772_v60 = vpop.eup %1771  ;;  %1308 = vmatpush1.xpose.msra.mxu0 %v1180_v22 }
 0x3b7   : > { %v1179_v3 = vmul.f32 %v1772_v60, %v2350_v54  ;;  %v1178_v61 = vmul.f32 %v1772_v60, %v2346_v33 }
 0x3b8   : > { %v1038_v12 = vpop.xlane.xlu0 %1037 }
 0x3b9   : > { %1785 = vrcp.f32 %v1038_v12  ;;  %1243 = vst [vmem:[%s2529_s14 + $0x78] sm:$0xff] %v1179_v3  ;;  %1309 = vmatprep.subr.mxu0 %v1179_v3  ;;  %1242 = vst [vmem:[%s2529_s14 + $0x70] sm:$0xff] %v1178_v61 }
 0x3ba   : > { %v1774_v59 = vpop.eup %1773  ;;  %1310 = vmatpush1.xpose.msra.mxu0 %v1178_v61 }
 0x3bb   : > { %v1175_v55 = vmul.f32 %v1774_v59, %v2360_v16  ;;  %v1174_v9 = vmul.f32 %v1774_v59, %v2356_v26  ;;  %v1776_v11 = vpop.eup %1775 }
 0x3bc   : > { %v1177_v52 = vmul.f32 %v1776_v11, %v2354_v23  ;;  %v1176_v33 = vmul.f32 %v1776_v11, %v2352_v7 }
 0x3bd   : > { %1239 = vst [vmem:[%s2529_s14 + $0x58] sm:$0xff] %v1175_v55  ;;  %1238 = vst [vmem:[%s2529_s14 + $0x50] sm:$0xff] %v1174_v9 }
 0x3be   : > { %v1778_v54 = vpop.eup %1777  ;;  %1241 = vst [vmem:[%s2529_s14 + $0x68] sm:$0xff] %v1177_v52  ;;  %1311 = vmatprep.subr.mxu0 %v1177_v52  ;;  %1240 = vst [vmem:[%s2529_s14 + $0x60] sm:$0xff] %v1176_v33 }
 0x3bf   : > { %v1171_v16 = vmul.f32 %v1778_v54, %v2372_v58  ;;  %v1170_v26 = vmul.f32 %v1778_v54, %v2368_v4  ;;  %v1780_v42 = vpop.eup %1779  ;;  %1312 = vmatpush1.xpose.msra.mxu0 %v1176_v33 }
 0x3c0   : > { %1313 = vmatprep.subr.mxu0 %v1175_v55  ;;  %v1173_v23 = vmul.f32 %v1780_v42, %v2366_v1  ;;  %v1172_v7 = vmul.f32 %v1780_v42, %v2789_v24 }
 0x3c1   : > { %1235 = vst [vmem:[%s2529_s14 + $0x38] sm:$0xff] %v1171_v16  ;;  %1234 = vst [vmem:[%s2529_s14 + $0x30] sm:$0xff] %v1170_v26 }
 0x3c2   : > { %v1782_v6 = vpop.eup %1781  ;;  %1237 = vst [vmem:[%s2529_s14 + $0x48] sm:$0xff] %v1173_v23  ;;  %1236 = vst [vmem:[%s2529_s14 + $0x40] sm:$0xff] %v1172_v7 }
 0x3c3   : > { %v1167_v58 = vmul.f32 %v1782_v6, %v2790_v14  ;;  %v1166_v4 = vmul.f32 %v1782_v6, %v2791_v50  ;;  %v1784_v20 = vpop.eup %1783  ;;  %1314 = vmatpush1.xpose.msra.mxu0 %v1174_v9  ;;  %v2793_v6 = vld [vmem:[#allocation7_spill] sm:$0xff] }
 0x3c4   : > { %v1128_v5 = vpop.xlane.xlu0 %1127  ;;  %1315 = vmatprep.subr.mxu0 %v1173_v23  ;;  %v1169_v1 = vmul.f32 %v1784_v20, %v2378_v43  ;;  %v1168_v2 = vmul.f32 %v1784_v20, %v2374_v45 }
 0x3c5   : > { %1787 = vrcp.f32 %v1128_v5  ;;  %1231 = vst [vmem:[%s2529_s14 + $0x18] sm:$0xff] %v1167_v58  ;;  %1230 = vst [vmem:[%s2529_s14 + $0x10] sm:$0xff] %v1166_v4 }
 0x3c6   : > { %1233 = vst [vmem:[%s2529_s14 + $0x28] sm:$0xff] %v1169_v1  ;;  %1232 = vst [vmem:[%s2529_s14 + $0x20] sm:$0xff] %v1168_v2  ;;  %v1786_v21 = vpop.eup %1785 }
 0x3c7   : > { %1316 = vmatpush1.xpose.msra.mxu0 %v1172_v7  ;;  %v1165_v29 = vmul.f32 %v1786_v21, %v2398_v8  ;;  %v1164_v51 = vmul.f32 %v1786_v21, %v2393_v63 }
 0x3c8   : > { %v1122_v38 = vpop.xlane.xlu0 %1121  ;;  %1317 = vmatprep.subr.mxu0 %v1171_v16 }
 0x3c9   : > { %1789 = vrcp.f32 %v1122_v38  ;;  %1229 = vst [vmem:[%s2529_s14 + $0x8] sm:$0xff] %v1165_v29  ;;  %1228 = vst [vmem:[%s2529_s14] sm:$0xff] %v1164_v51 }
 0x3ca   : > { %v1131_v62 = vpop.xlane.xlu1 %1130 }
 0x3cb   : > { %1791 = vrcp.f32 %v1131_v62  ;;  %1318 = vmatpush1.xpose.msra.mxu0 %v1170_v26  ;;  %v2796_v62 = vld [vmem:[#allocation15_spill] sm:$0xff] }
 0x3cc   : > { %v1116_v45 = vpop.xlane.xlu0 %1115  ;;  %1319 = vmatprep.subr.mxu0 %v1169_v1 }
 0x3cd   : > { %1793 = vrcp.f32 %v1116_v45  ;;  %v2797_v45 = vld [vmem:[#allocation17_spill] sm:$0xff] }
 0x3ce   : > { %v1125_v43 = vpop.xlane.xlu1 %1124 }
 0x3cf   : > { %1795 = vrcp.f32 %v1125_v43  ;;  %1320 = vmatpush1.xpose.msra.mxu0 %v1168_v2 }
 0x3d0   : > { %1321 = vmatprep.subr.mxu0 %v1167_v58 }
 0x3d2   : > { %v1788_v15 = vpop.eup %1787  ;;  %v1119_v22 = vpop.xlane.xlu1 %1118 }
 0x3d3   : > { %1797 = vrcp.f32 %v1119_v22  ;;  %v1225_v8 = vmul.f32 %v1788_v15, %v2412_v27  ;;  %v1224_v63 = vmul.f32 %v1788_v15, %v2410_v30  ;;  %1322 = vmatpush1.xpose.msra.mxu0 %v1166_v4 }
 0x3d4   : > { %1323 = vmatprep.subr.mxu0 %v1165_v29  ;;  %v2795_v29 = vld [vmem:[#allocation19_spill] sm:$0xff] }
 0x3d5   : > { %1289 = vst [vmem:[%s2529_s14 + $0x1e8] sm:$0xff] %v1225_v8  ;;  %1288 = vst [vmem:[%s2529_s14 + $0x1e0] sm:$0xff] %v1224_v63 }
 0x3d6   : > { %v1790_v46 = vpop.eup %1789  ;;  %v1113_v60 = vpop.xlane.xlu1 %1112 }
 0x3d7   : > { %1799 = vrcp.f32 %v1113_v60  ;;  %v1221_v3 = vmul.f32 %v1790_v46, %v2420_v13  ;;  %v1220_v61 = vmul.f32 %v1790_v46, %v2418_v53  ;;  %1324 = vmatpush1.xpose.msra.mxu0 %v1164_v51 }
 0x3d8   : > { %v1792_v59 = vpop.eup %1791  ;;  %v1110_v27 = vpop.xlane.xlu0 %1109 }
 0x3d9   : > { %1801 = vrcp.f32 %v1110_v27  ;;  %v1227_v30 = vmul.f32 %v1792_v59, %v2426_v48  ;;  %v1226_v12 = vmul.f32 %v1792_v59, %v2422_v57  ;;  %1285 = vst [vmem:[%s2529_s14 + $0x1c8] sm:$0xff] %v1221_v3  ;;  %1284 = vst [vmem:[%s2529_s14 + $0x1c0] sm:$0xff] %v1220_v61 }
 0x3da   : > { %v1794_v55 = vpop.eup %1793 }
 0x3db   : > { %1291 = vst [vmem:[%s2529_s14 + $0x1f8] sm:$0xff] %v1227_v30  ;;  %1325 = vmatprep.subr.mxu0 %v1227_v30  ;;  %1290 = vst [vmem:[%s2529_s14 + $0x1f0] sm:$0xff] %v1226_v12  ;;  %v1217_v53 = vmul.f32 %v1794_v55, %v2434_v18  ;;  %v1216_v13 = vmul.f32 %v1794_v55, %v2430_v49 }
 0x3dc   : > { %v1796_v9 = vpop.eup %1795  ;;  %1326 = vmatpush2.xpose.msra.mxu0 %v1226_v12  ;;  %v1107_v11 = vpop.xlane.xlu1 %1106 }
 0x3dd   : > { %1327 = vmatprep.subr.mxu0 %v1225_v8  ;;  %1803 = vrcp.f32 %v1107_v11  ;;  %v1223_v57 = vmul.f32 %v1796_v9, %v2440_v56  ;;  %v1222_v48 = vmul.f32 %v1796_v9, %v2436_v40  ;;  %1281 = vst [vmem:[%s2529_s14 + $0x1a8] sm:$0xff] %v1217_v53  ;;  %1280 = vst [vmem:[%s2529_s14 + $0x1a0] sm:$0xff] %v1216_v13 }
 0x3df   : > { %1287 = vst [vmem:[%s2529_s14 + $0x1d8] sm:$0xff] %v1223_v57  ;;  %1286 = vst [vmem:[%s2529_s14 + $0x1d0] sm:$0xff] %v1222_v48 }
 0x3e0   : > { %v1798_v52 = vpop.eup %1797  ;;  %1328 = vmatpush2.xpose.msra.mxu0 %v1224_v63  ;;  %v1104_v18 = vpop.xlane.xlu0 %1103  ;;  %v1819_v63 = vld [vmem:[%s1998_s9] sm:$0xff]  ;;  %s1826_s9 = scalar_lea.vmem %s1825_s8, 16384 }
 0x3e1   : > { %1329 = vmatprep.subr.mxu0 %v1223_v57  ;;  %1805 = vrcp.f32 %v1104_v18  ;;  %v1219_v49 = vmul.f32 %v1798_v52, %v2448_v34  ;;  %v1218_v33 = vmul.f32 %v1798_v52, %v2444_v31  ;;  %p1828_p2 = scmp.lt.s32.totalorder %s1826_s9, %s1820_s7 }
 0x3e3   : > { %1283 = vst [vmem:[%s2529_s14 + $0x1b8] sm:$0xff] %v1219_v49  ;;  %1282 = vst [vmem:[%s2529_s14 + $0x1b0] sm:$0xff] %v1218_v33  ;;  %p1829_p3 = por %p1828_p2, %p1827_p1 }
 0x3e4   : > { %v1800_v56 = vpop.eup %1799  ;;  %1330 = vmatpush2.xpose.msra.mxu0 %v1222_v48  ;;  %v1101_v40 = vpop.xlane.xlu1 %1100 }
 0x3e5   : > { %1331 = vmatprep.subr.mxu0 %v1221_v3  ;;  %1807 = vrcp.f32 %v1101_v40  ;;  %v1215_v54 = vmul.f32 %v1800_v56, %v2456_v17  ;;  %v1214_v16 = vmul.f32 %v1800_v56, %v2454_v10  ;;  %v2792_v10 = vld [vmem:[#allocation9_spill] sm:$0xff]  ;;  %p1830_p5 = pnand %p1829_p3, %p1823_p0 }
 0x3e6   : > { %v1802_v26 = vpop.eup %1801 }
 0x3e7   : > { %1279 = vst [vmem:[%s2529_s14 + $0x198] sm:$0xff] %v1215_v54  ;;  %1278 = vst [vmem:[%s2529_s14 + $0x190] sm:$0xff] %v1214_v16  ;;  %v1213_v34 = vmul.f32 %v1802_v26, %v2464_v39  ;;  %v1212_v31 = vmul.f32 %v1802_v26, %v2462_v32 }
 0x3e8   : > { %1332 = vmatpush2.xpose.msra.mxu0 %v1220_v61  ;;  %v1098_v42 = vpop.xlane.xlu0 %1097 }
 0x3e9   : > { %1333 = vmatprep.subr.mxu0 %v1219_v49  ;;  %1809 = vrcp.f32 %v1098_v42  ;;  %1277 = vst [vmem:[%s2529_s14 + $0x188] sm:$0xff] %v1213_v34  ;;  %1276 = vst [vmem:[%s2529_s14 + $0x180] sm:$0xff] %v1212_v31 }
 0x3ea   : > { %v1804_v23 = vpop.eup %1803 }
 0x3eb   : > { %v1211_v17 = vmul.f32 %v1804_v23, %v2472_v47  ;;  %v1210_v24 = vmul.f32 %v1804_v23, %v2792_v10 }
 0x3ec   : > { %1334 = vmatpush2.xpose.msra.mxu0 %v1218_v33  ;;  %v1095_v7 = vpop.xlane.xlu1 %1094 }
 0x3ed   : > { %1335 = vmatprep.subr.mxu0 %v1217_v53  ;;  %1811 = vrcp.f32 %v1095_v7  ;;  %1275 = vst [vmem:[%s2529_s14 + $0x178] sm:$0xff] %v1211_v17  ;;  %1274 = vst [vmem:[%s2529_s14 + $0x170] sm:$0xff] %v1210_v24 }
 0x3ee   : > { %v1806_v32 = vpop.eup %1805 }
 0x3ef   : > { %v1209_v39 = vmul.f32 %v1806_v32, %v2480_v28  ;;  %v1208_v14 = vmul.f32 %v1806_v32, %v2793_v6 }
 0x3f0   : > { %1336 = vmatpush2.xpose.msra.mxu0 %v1216_v13  ;;  %v1092_v58 = vpop.xlane.xlu0 %1091 }
 0x3f1   : > { %1337 = vmatprep.subr.mxu0 %v1215_v54  ;;  %1813 = vrcp.f32 %v1092_v58  ;;  %1273 = vst [vmem:[%s2529_s14 + $0x168] sm:$0xff] %v1209_v39  ;;  %1272 = vst [vmem:[%s2529_s14 + $0x160] sm:$0xff] %v1208_v14 }
 0x3f2   : > { %v1808_v47 = vpop.eup %1807 }
 0x3f3   : > { %v1207_v50 = vmul.f32 %v1808_v47, %v2488_v0  ;;  %v1206_v4 = vmul.f32 %v1808_v47, %v2486_v37 }
 0x3f4   : > { %1338 = vmatpush2.xpose.msra.mxu0 %v1214_v16  ;;  %v1089_v20 = vpop.xlane.xlu1 %1088 }
 0x3f5   : > { %1339 = vmatprep.subr.mxu0 %v1213_v34  ;;  %1815 = vrcp.f32 %v1089_v20  ;;  %1271 = vst [vmem:[%s2529_s14 + $0x158] sm:$0xff] %v1207_v50  ;;  %1270 = vst [vmem:[%s2529_s14 + $0x150] sm:$0xff] %v1206_v4 }
 0x3f6   : > { %v1810_v28 = vpop.eup %1809 }
 0x3f7   : > { %v1205_v5 = vmul.f32 %v1810_v28, %v2496_v35  ;;  %v1204_v1 = vmul.f32 %v1810_v28, %v2494_v19  ;;  %v2794_v35 = vld [vmem:[#allocation18_spill] sm:$0xff] }
 0x3f8   : > { %1340 = vmatpush2.xpose.msra.mxu0 %v1212_v31  ;;  %v1086_v2 = vpop.xlane.xlu0 %1085 }
 0x3f9   : > { %1341 = vmatprep.subr.mxu0 %v1211_v17  ;;  %1817 = vrcp.f32 %v1086_v2  ;;  %1269 = vst [vmem:[%s2529_s14 + $0x148] sm:$0xff] %v1205_v5  ;;  %1268 = vst [vmem:[%s2529_s14 + $0x140] sm:$0xff] %v1204_v1 }
 0x3fa   : > { %v1812_v37 = vpop.eup %1811 }
 0x3fb   : > { %v1203_v0 = vmul.f32 %v1812_v37, %v2502_v41  ;;  %v1202_v21 = vmul.f32 %v1812_v37, %v2500_v36 }
 0x3fc   : > { %1342 = vmatpush2.xpose.msra.mxu0 %v1210_v24 }
 0x3fd   : > { %1343 = vmatprep.subr.mxu0 %v1209_v39  ;;  %1267 = vst [vmem:[%s2529_s14 + $0x138] sm:$0xff] %v1203_v0  ;;  %1266 = vst [vmem:[%s2529_s14 + $0x130] sm:$0xff] %v1202_v21 }
 0x3fe   : > { %v1814_v19 = vpop.eup %1813 }
 0x3ff   : > { %v1201_v38 = vmul.f32 %v1814_v19, %v2794_v35  ;;  %v1200_v51 = vmul.f32 %v1814_v19, %v2795_v29 }
 0x400   : > { %1344 = vmatpush2.xpose.msra.mxu0 %v1208_v14 }
 0x401   : > { %1345 = vmatprep.subr.mxu0 %v1207_v50  ;;  %1265 = vst [vmem:[%s2529_s14 + $0x128] sm:$0xff] %v1201_v38  ;;  %1264 = vst [vmem:[%s2529_s14 + $0x120] sm:$0xff] %v1200_v51 }
 0x402   : > { %v1816_v41 = vpop.eup %1815 }
 0x403   : > { %v1199_v36 = vmul.f32 %v1816_v41, %v2796_v62  ;;  %v1198_v43 = vmul.f32 %v1816_v41, %v2797_v45 }
 0x404   : > { %1346 = vmatpush2.xpose.msra.mxu0 %v1206_v4 }
 0x405   : > { %1347 = vmatprep.subr.mxu0 %v1205_v5  ;;  %1263 = vst [vmem:[%s2529_s14 + $0x118] sm:$0xff] %v1199_v36  ;;  %1262 = vst [vmem:[%s2529_s14 + $0x110] sm:$0xff] %v1198_v43 }
 0x406   : > { %v1818_v15 = vpop.eup %1817 }
 0x407   : > { %v1197_v22 = vmul.f32 %v1818_v15, %v2520_v44  ;;  %v1196_v8 = vmul.f32 %v1818_v15, %v2518_v25 }
 0x408   : > { %1348 = vmatpush2.xpose.msra.mxu0 %v1204_v1 }
 0x409   : > { %1349 = vmatprep.subr.mxu0 %v1203_v0  ;;  %1261 = vst [vmem:[%s2529_s14 + $0x108] sm:$0xff] %v1197_v22  ;;  %1260 = vst [vmem:[%s2529_s14 + $0x100] sm:$0xff] %v1196_v8 }
 0x40c   : > { %1350 = vmatpush2.xpose.msra.mxu0 %v1202_v21 }
 0x40d   : > { %1351 = vmatprep.subr.mxu0 %v1201_v38 }
 0x410   : > { %1352 = vmatpush2.xpose.msra.mxu0 %v1200_v51 }
 0x411   : > { %1353 = vmatprep.subr.mxu0 %v1199_v36 }
 0x414   : > { %1354 = vmatpush2.xpose.msra.mxu0 %v1198_v43 }
 0x415   : > { %1355 = vmatprep.subr.mxu0 %v1197_v22 }
 0x418   : > { %1356 = vmatpush2.xpose.msra.mxu0 %v1196_v8 }
 0x41b   : > { %1358 = vmatmul.mubr.f32.vlgmr.msra.gmra.mxu0 %v1819_v63 }
 0x41c   : > { %1833 = shalt.err (!%p1830_p5)
}
 0x41d   : > { %s1834_s10 = scalar_lea.hbm %s2663_s29, 8192  ;;  %s1838_s13 = scalar_lea.hbm %s2724_s4, 16384 }
 0x41e   : > { %p1835_p6 = scmp.ne.s32.totalorder %s2663_s29, %s1834_s10  ;;  %p1839_p10 = scmp.lt.s32.totalorder %s2663_s29, %s2724_s4 }
 0x41f   : > { %p1840_p11 = scmp.lt.s32.totalorder %s1838_s13, %s1834_s10 }
 0x420   : > { %p1836_p7 = pnand %p1835_p6, %p1968_p4 }
 0x421   : > { %p1841_p12 = por %p1840_p11, %p1839_p10 }
 0x422   : > { %p1837_p9 = pneg %p1836_p7 }
 0x424   : > { %p1842_p13 = pnand %p1841_p12, %p1837_p9 }
 0x426   : > { %1845 = shalt.err (!%p1842_p13)
}
 0x427   : > { %s1901_s24 = smov 256   ;;  %s1902_s26 = smov 16   ;;  %v2798_v60 = vld [vmem:[#allocation5_spill] sm:$0xff] }
 0x428   : > { %1566 = dma.vmem_to_hbm [thread:$0]  (%p1968_p4), %s2665_s22, 8192, %s2663_s29, %s2669_s30, %s1901_s24, %s1901_s24, %s1902_s26  }
 0x429   : > { %s232_s8 = scalar_lea.vmem %s2723_s3, %s1563_s6 }
 0x4db   : > { %v1359_v25 = vpop.f32.mrf.mxu0 }
 0x4dc   : > { %v1360_v44 = vadd.f32 %v1819_v63, %v1359_v25 }
 0x4dd   : > { %v1361_v46 = vpop.f32.mrf.mxu0 }
 0x4de   : > { %v1362_v3 = vadd.f32 %v1361_v46, %v2798_v60  ;;  %v1364_v61 = vmax.f32 %v1360_v44, 0.0 }
 0x4e0   : > { %v1365_v59 = vmax.f32 %v1362_v3, 0.0 }
 0x4e2   : > { %v1368_v27 = vcombine.low %v1364_v61, %v1365_v59 }
 0x4e4   : > { %1370 = vst [vmem:[%s232_s8] sm:$0xff] %v1368_v27 }
 0x4e5 PF: > { %p1572_p0 = scmp.ge.s32.totalorder %s1896_s20, 2  ;;  %s1428_s25 = sand.u32 1, %s1876_s15  }
 0x4e6   : > { %s1429_s22 = scalar_lea.sflag [#allocation3], %s1428_s25 }
 0x4e7   : > { %p1569_p4 = pnand %p1572_p0, %p1975_p8 }
 0x4e9   : > { %p1570_p1 = pneg %p1569_p4 }
 0x4eb   : > { %1871 = dma.done.wait (%p1570_p1), %s1429_s22, 8192  }
 0x4ec   : > { %1873 = vsyncadd (%p1570_p1), %s1429_s22, 4294959104  ;;  %s18_s20 = sadd.s32 1, %s1896_s20   ;;  %s2799_s15 = smov %s1880_s16 }
 0x4ed   : > { %p15_p2 = scmp.ge.s32.totalorder %s18_s20, 4   ;;  %s2800_s16 = smov %s1884_s17 }
 0x4ee   : > { %s2801_s17 = smov %s1981_s28  ;;  %s2802_s18 = smov %s1892_s19 }
 0x4ef   : > { %s2803_s19 = smov %s2805_s23  ;;  %17 = sbr.rel (!%p15_p2) target bundleno = 4 (0x4), region = 79 }
 0x4f4   :  { %1434 = vsyncpa [#allocation3], 1 }
 0x4f5   :  { %1436 = vsyncpa [#allocation3 + $0x1], 1 }

</bundles_post_ra>
